<compile_context>
chip_gen: v5e
topology: v5e:2x2
jax: 0.10.0
libtpu: 0.0.40
codegen_flags: <defaults>
</compile_context>

<pallas_src>
import jax
import jax.numpy as jnp
import numpy as np
from jax.experimental import pallas as pl
from jax.experimental.pallas import tpu as pltpu


def _round_up(x, m):
    return (x + m - 1) // m * m


def _cdiv(a, b):
    return (a + b - 1) // b


def _pick_tile(extent, tmax, unit):
    """Largest tile <= tmax (multiple of `unit`) that still yields >=2 grid
    steps whenever extent > unit (keeps both v7x TensorCores busy)."""
    half = _round_up(_cdiv(extent, 2), unit)
    return max(unit, min(_round_up(tmax, unit), half))


# ----------------------------------------------------------------------------
# Kernel 1: fused Conv2d (valid, stride 1) + bias + ReLU + MaxPool(2,2)
#   w_ref : (Cout, K)   bf16, K = Cin*KH*KW          (resident across grid)
#   b_ref : (Cout, 1)   f32
#   pq_ref: (K, TP)     bf16 quadrant-q im2col block (q = 0..3, the 2x2 taps)
#   o_ref : (Cout, TP)  bf16 lane-dense pooled output block
# ----------------------------------------------------------------------------
def _conv_pool_kernel(w_ref, b_ref, p0_ref, p1_ref, p2_ref, p3_ref, o_ref):
    w = w_ref[...]
    m = jnp.dot(w, p0_ref[...], preferred_element_type=jnp.float32)
    for p_ref in (p1_ref, p2_ref, p3_ref):
        m = jnp.maximum(
            m, jnp.dot(w, p_ref[...], preferred_element_type=jnp.float32))
    # pool(relu(conv + b)) == relu(max_q(conv_q) + b)  (bias-add, ReLU monotone)
    m = m + b_ref[...]
    o_ref[...] = jnp.maximum(m, 0.0).astype(o_ref.dtype)


def _quadrant_patches(x_cnhw, kh, kw, p_pad):
    """Quadrant im2col (XLA side).  quad[q][ci*kh*kw + dy*kw + dx,
    n*poh*pow + py*pow + px] = x[ci, n, 2*py + qy + dy, 2*px + qx + dx]."""
    cin, n, h, w = x_cnhw.shape
    oh, ow = h - kh + 1, w - kw + 1
    poh, pow_ = oh // 2, ow // 2
    k, p = cin * kh * kw, n * poh * pow_
    quads = []
    for qy in range(2):
        for qx in range(2):
            taps = []
            for dy in range(kh):
                for dx in range(kw):
                    taps.append(
                        x_cnhw[:, :,
                               qy + dy:qy + dy + 2 * poh:2,
                               qx + dx:qx + dx + 2 * pow_:2])
            t = jnp.stack(taps, axis=1).reshape(k, p)   # (Cin*kh*kw, N*poh*pow)
            if p_pad != p:
                t = jnp.pad(t, ((0, 0), (0, p_pad - p)))
            quads.append(t)
    return quads


def conv_relu_pool(x_cnhw, w_flat, b_col, *, kh, kw, tp=2048):
    """x_cnhw: (Cin, N, H, W) bf16; w_flat: (Cout, Cin*kh*kw) bf16;
    b_col: (Cout, 1) f32.  Returns pooled activations (Cout, N, OH//2, OW//2)
    in bf16 (C-major layout, no transposes needed between conv stages)."""
    cin, n, h, w = x_cnhw.shape
    cout, k = w_flat.shape
    assert k == cin * kh * kw
    oh, ow = h - kh + 1, w - kw + 1
    poh, pow_ = oh // 2, ow // 2
    p = n * poh * pow_

    tp = _pick_tile(p, tp, 128)          # lane tile; >=2 grid steps when p > 128
    p_pad = _round_up(p, tp)
    quads = _quadrant_patches(x_cnhw, kh, kw, p_pad)

    out = pl.pallas_call(
        _conv_pool_kernel,
        out_shape=jax.ShapeDtypeStruct((cout, p_pad), jnp.bfloat16),
        grid=(p_pad // tp,),
        in_specs=[
            pl.BlockSpec((cout, k), lambda i: (0, 0)),
            pl.BlockSpec((cout, 1), lambda i: (0, 0)),
            pl.BlockSpec((k, tp), lambda i: (0, i)),
            pl.BlockSpec((k, tp), lambda i: (0, i)),
            pl.BlockSpec((k, tp), lambda i: (0, i)),
            pl.BlockSpec((k, tp), lambda i: (0, i)),
        ],
        out_specs=pl.BlockSpec((cout, tp), lambda i: (0, i)),
        compiler_params=pltpu.CompilerParams(
            dimension_semantics=("parallel",),
            vmem_limit_bytes=32 * 1024 * 1024,
        ),
    )(w_flat, b_col, *quads)
    return out[:, :p].reshape(cout, n, poh, pow_)


# ----------------------------------------------------------------------------
# Kernel 2: fused fc1 + ReLU + fc2 + ReLU + fc3 (single launch, weights in VMEM)
#   x_ref : (16, TN, 25) bf16  conv2 activations in native channel-major layout
#   w1_ref: (16, 25, l1) bf16  (fc1 weight pre-reshaped; no flatten transpose)
#   w2_ref: (l1, l2) bf16, w3_ref: (l2, 128) bf16 (output lane-padded to 128)
# ----------------------------------------------------------------------------
def _fc_stack_kernel(x_ref, w1_ref, b1_ref, w2_ref, b2_ref, w3_ref, b3_ref,
                     o_ref):
    c = x_ref.shape[0]
    h = jnp.dot(x_ref[0], w1_ref[0], preferred_element_type=jnp.float32)
    for ci in range(1, c):
        h = h + jnp.dot(x_ref[ci], w1_ref[ci],
                        preferred_element_type=jnp.float32)
    h = jnp.maximum(h + b1_ref[...], 0.0).astype(w2_ref.dtype)
    h = jnp.dot(h, w2_ref[...], preferred_element_type=jnp.float32) + b2_ref[...]
    h = jnp.maximum(h, 0.0).astype(w3_ref.dtype)
    h = jnp.dot(h, w3_ref[...], preferred_element_type=jnp.float32) + b3_ref[...]
    o_ref[...] = h.astype(o_ref.dtype)


def fc_stack(x_cns, w1, b1, w2, b2, w3, b3, *, tm=1024):
    """x_cns: (16, N, 25) bf16 (conv2 output layout); returns (N, 128) f32."""
    c, n, s = x_cns.shape
    n_out = w3.shape[1]
    tn = _pick_tile(n, tm, 8)
    n_pad = _round_up(n, tn)
    if n_pad != n:
        x_cns = jnp.pad(x_cns, ((0, 0), (0, n_pad - n), (0, 0)))

    out = pl.pallas_call(
        _fc_stack_kernel,
        out_shape=jax.ShapeDtypeStruct((n_pad, n_out), jnp.float32),
        grid=(n_pad // tn,),
        in_specs=[
            pl.BlockSpec((c, tn, s), lambda i: (0, i, 0)),
            pl.BlockSpec(w1.shape, lambda i: (0, 0, 0)),
            pl.BlockSpec(b1.shape, lambda i: (0, 0)),
            pl.BlockSpec(w2.shape, lambda i: (0, 0)),
            pl.BlockSpec(b2.shape, lambda i: (0, 0)),
            pl.BlockSpec(w3.shape, lambda i: (0, 0)),
            pl.BlockSpec(b3.shape, lambda i: (0, 0)),
        ],
        out_specs=pl.BlockSpec((tn, n_out), lambda i: (i, 0)),
        compiler_params=pltpu.CompilerParams(
            dimension_semantics=("parallel",),
            vmem_limit_bytes=32 * 1024 * 1024,
        ),
    )(x_cns, w1, b1, w2, b2, w3, b3)
    return out[:n]


# ----------------------------------------------------------------------------
# Parameters (deterministic, PyTorch-like U(-1/sqrt(fan_in), 1/sqrt(fan_in)))
# ----------------------------------------------------------------------------
def _uniform(key, shape, fan_in):
    bound = 1.0 / float(np.sqrt(fan_in))
    return jax.random.uniform(key, shape, jnp.float32, -bound, bound)


def init_params(key, l1=8, l2=16):
    ks = jax.random.split(key, 10)
    p = {}
    p["conv1_w"] = _uniform(ks[0], (6, 3, 5, 5), 3 * 5 * 5)
    p["conv1_b"] = _uniform(ks[1], (6,), 3 * 5 * 5)
    p["conv2_w"] = _uniform(ks[2], (16, 6, 5, 5), 6 * 5 * 5)
    p["conv2_b"] = _uniform(ks[3], (16,), 6 * 5 * 5)
    p["fc1_w"] = _uniform(ks[4], (l1, 16 * 5 * 5), 16 * 5 * 5)
    p["fc1_b"] = _uniform(ks[5], (l1,), 16 * 5 * 5)
    p["fc2_w"] = _uniform(ks[6], (l2, l1), l1)
    p["fc2_b"] = _uniform(ks[7], (l2,), l1)
    p["fc3_w"] = _uniform(ks[8], (10, l2), l2)
    p["fc3_b"] = _uniform(ks[9], (10,), l2)
    return p


def prepare_params(p):
    """One-time layout prep (outside the jitted forward): flatten + bf16-cast
    conv weights, pad conv1 Cout 6->8 (full sublane tile), reshape fc1 weight
    to (16, 25, l1) so the flatten transpose disappears, pre-transpose fc2/fc3
    weights, and lane-pad the fc3 output dim 10->128."""
    l1 = p["fc1_w"].shape[0]
    l2 = p["fc2_w"].shape[0]
    q = {}
    w1 = jnp.pad(p["conv1_w"].reshape(6, 3 * 5 * 5), ((0, 2), (0, 0)))
    q["conv1_w"] = w1.astype(jnp.bfloat16)                          # (8, 75)
    q["conv1_b"] = jnp.pad(p["conv1_b"], (0, 2)).reshape(8, 1).astype(jnp.float32)
    q["conv2_w"] = p["conv2_w"].reshape(16, 6 * 5 * 5).astype(jnp.bfloat16)
    q["conv2_b"] = p["conv2_b"].reshape(16, 1).astype(jnp.float32)
    q["fc1_w"] = (p["fc1_w"].reshape(l1, 16, 25)
                  .transpose(1, 2, 0).astype(jnp.bfloat16))          # (16,25,l1)
    q["fc1_b"] = p["fc1_b"].reshape(1, l1).astype(jnp.float32)
    q["fc2_w"] = p["fc2_w"].T.astype(jnp.bfloat16)                   # (l1, l2)
    q["fc2_b"] = p["fc2_b"].reshape(1, l2).astype(jnp.float32)
    w3 = jnp.pad(p["fc3_w"].T, ((0, 0), (0, 128 - 10)))              # (l2, 128)
    q["fc3_w"] = w3.astype(jnp.bfloat16)
    q["fc3_b"] = jnp.pad(p["fc3_b"], (0, 128 - 10)).reshape(1, 128).astype(jnp.float32)
    return q


# ----------------------------------------------------------------------------
# Forward pass (same semantics as Net.forward)
# ----------------------------------------------------------------------------
@jax.jit
def net_forward(params, x):
    # x: (N, 3, 32, 32) float32, NCHW (PyTorch layout at the boundary).
    n = x.shape[0]
    xc = jnp.transpose(x, (1, 0, 2, 3)).astype(jnp.bfloat16)  # (3, N, 32, 32)
    a1 = conv_relu_pool(xc, params["conv1_w"], params["conv1_b"],
                        kh=5, kw=5)                           # (8, N, 14, 14)
    a1 = a1[:6]              # drop zero-padded channels before conv2 patches
    a2 = conv_relu_pool(a1, params["conv2_w"], params["conv2_b"],
                        kh=5, kw=5)                           # (16, N, 5, 5)
    a2 = a2.reshape(16, n, 25)                                # free reshape
    out = fc_stack(a2,
                   params["fc1_w"], params["fc1_b"],
                   params["fc2_w"], params["fc2_b"],
                   params["fc3_w"], params["fc3_b"])          # (N, 128)
    return out[:, :10]


if __name__ == "__main__":
    key = jax.random.PRNGKey(0)
    pkey, xkey = jax.random.split(key)
    params = prepare_params(init_params(pkey, l1=8, l2=16))
    # The forward math requires 3 input channels and 32x32 spatial (CIFAR-like).
    x = jax.random.normal(xkey, (2, 3, 32, 32), dtype=jnp.float32)
    out = jax.block_until_ready(net_forward(params, x))
    assert out.shape == (2, 10) and out.dtype == jnp.float32
    assert bool(jnp.all(jnp.isfinite(out)))
    print("KERNEL_OK")
</pallas_src>

<mosaic_0001>
module attributes {stable_mosaic.version = 11 : i64} {
  func.func @_conv_pool_kernel(%arg0: i32, %arg1: memref<8x75xbf16, #tpu.memory_space<vmem>>, %arg2: memref<8x1xf32, #tpu.memory_space<vmem>>, %arg3: memref<75x256xbf16, #tpu.memory_space<vmem>>, %arg4: memref<75x256xbf16, #tpu.memory_space<vmem>>, %arg5: memref<75x256xbf16, #tpu.memory_space<vmem>>, %arg6: memref<75x256xbf16, #tpu.memory_space<vmem>>, %arg7: memref<8x256xbf16, #tpu.memory_space<vmem>>) attributes {dimension_semantics = [#tpu.dimension_semantics<parallel>], iteration_bounds = array<i64: 2>, scalar_prefetch = 0 : i64, scratch_operands = 0 : i64, tpu.core_type = #tpu.core_type<tc>, window_params = [{pipeline_mode = #tpu.pipeline_mode<synchronous>, transform_indices = @transform_0, window_bounds = array<i64: 8, 75>}, {pipeline_mode = #tpu.pipeline_mode<synchronous>, transform_indices = @transform_1, window_bounds = array<i64: 8, 1>}, {transform_indices = @transform_2, window_bounds = array<i64: 75, 256>}, {transform_indices = @transform_3, window_bounds = array<i64: 75, 256>}, {transform_indices = @transform_4, window_bounds = array<i64: 75, 256>}, {transform_indices = @transform_5, window_bounds = array<i64: 75, 256>}, {transform_indices = @transform_6, window_bounds = array<i64: 8, 256>}]} {
    %c0 = arith.constant 0 : index
    %c0_0 = arith.constant 0 : index
    %0 = vector.load %arg1[%c0, %c0_0] : memref<8x75xbf16, #tpu.memory_space<vmem>>, vector<8x75xbf16>
    %c0_1 = arith.constant 0 : index
    %c0_2 = arith.constant 0 : index
    %1 = vector.load %arg3[%c0_1, %c0_2] : memref<75x256xbf16, #tpu.memory_space<vmem>>, vector<75x256xbf16>
    %cst = arith.constant dense<0.000000e+00> : vector<8x256xf32>
    %2 = tpu.matmul %0, %1, %cst {dimension_numbers = #tpu.dot_dimension_numbers<[1], [0], [0], [1], [0, 0, 1, 1], [], []>} : vector<8x75xbf16>, vector<75x256xbf16>, vector<8x256xf32> -> vector<8x256xf32>
    %c0_3 = arith.constant 0 : index
    %c0_4 = arith.constant 0 : index
    %3 = vector.load %arg4[%c0_3, %c0_4] : memref<75x256xbf16, #tpu.memory_space<vmem>>, vector<75x256xbf16>
    %cst_5 = arith.constant dense<0.000000e+00> : vector<8x256xf32>
    %4 = tpu.matmul %0, %3, %cst_5 {dimension_numbers = #tpu.dot_dimension_numbers<[1], [0], [0], [1], [0, 0, 1, 1], [], []>} : vector<8x75xbf16>, vector<75x256xbf16>, vector<8x256xf32> -> vector<8x256xf32>
    %5 = arith.maximumf %2, %4 : vector<8x256xf32>
    %c0_6 = arith.constant 0 : index
    %c0_7 = arith.constant 0 : index
    %6 = vector.load %arg5[%c0_6, %c0_7] : memref<75x256xbf16, #tpu.memory_space<vmem>>, vector<75x256xbf16>
    %cst_8 = arith.constant dense<0.000000e+00> : vector<8x256xf32>
    %7 = tpu.matmul %0, %6, %cst_8 {dimension_numbers = #tpu.dot_dimension_numbers<[1], [0], [0], [1], [0, 0, 1, 1], [], []>} : vector<8x75xbf16>, vector<75x256xbf16>, vector<8x256xf32> -> vector<8x256xf32>
    %8 = arith.maximumf %5, %7 : vector<8x256xf32>
    %c0_9 = arith.constant 0 : index
    %c0_10 = arith.constant 0 : index
    %9 = vector.load %arg6[%c0_9, %c0_10] : memref<75x256xbf16, #tpu.memory_space<vmem>>, vector<75x256xbf16>
    %cst_11 = arith.constant dense<0.000000e+00> : vector<8x256xf32>
    %10 = tpu.matmul %0, %9, %cst_11 {dimension_numbers = #tpu.dot_dimension_numbers<[1], [0], [0], [1], [0, 0, 1, 1], [], []>} : vector<8x75xbf16>, vector<75x256xbf16>, vector<8x256xf32> -> vector<8x256xf32>
    %11 = arith.maximumf %8, %10 : vector<8x256xf32>
    %c0_12 = arith.constant 0 : index
    %c0_13 = arith.constant 0 : index
    %12 = vector.load %arg2[%c0_12, %c0_13] : memref<8x1xf32, #tpu.memory_space<vmem>>, vector<8x1xf32>
    %13 = vector.broadcast %12 : vector<8x1xf32> to vector<8x256xf32>
    %14 = arith.addf %11, %13 : vector<8x256xf32>
    %cst_14 = arith.constant 0.000000e+00 : f32
    %15 = vector.broadcast %cst_14 : f32 to vector<8x256xf32>
    %16 = arith.maximumf %14, %15 : vector<8x256xf32>
    %17 = arith.truncf %16 : vector<8x256xf32> to vector<8x256xbf16>
    %c0_15 = arith.constant 0 : index
    %c0_16 = arith.constant 0 : index
    %18 = vector.load %arg7[%c0_15, %c0_16] : memref<8x256xbf16, #tpu.memory_space<vmem>>, vector<8x256xbf16>
    tpu.vector_store %arg7[%c0_15, %c0_16], %17 {strides = array<i32>} : memref<8x256xbf16, #tpu.memory_space<vmem>>, vector<8x256xbf16>,
    return
  }
  func.func @transform_0(%arg0: i32) -> (i32, i32) {
    %c0_i32 = arith.constant 0 : i32
    %c0_i32_0 = arith.constant 0 : i32
    %c0_i32_1 = arith.constant 0 : i32
    return %c0_i32, %c0_i32_0 : i32, i32
  }
  func.func @transform_1(%arg0: i32) -> (i32, i32) {
    %c0_i32 = arith.constant 0 : i32
    %c0_i32_0 = arith.constant 0 : i32
    %c0_i32_1 = arith.constant 0 : i32
    return %c0_i32, %c0_i32_0 : i32, i32
  }
  func.func @transform_2(%arg0: i32) -> (i32, i32) {
    %c0_i32 = arith.constant 0 : i32
    %c0_i32_0 = arith.constant 0 : i32
    return %c0_i32, %arg0 : i32, i32
  }
  func.func @transform_3(%arg0: i32) -> (i32, i32) {
    %c0_i32 = arith.constant 0 : i32
    %c0_i32_0 = arith.constant 0 : i32
    return %c0_i32, %arg0 : i32, i32
  }
  func.func @transform_4(%arg0: i32) -> (i32, i32) {
    %c0_i32 = arith.constant 0 : i32
    %c0_i32_0 = arith.constant 0 : i32
    return %c0_i32, %arg0 : i32, i32
  }
  func.func @transform_5(%arg0: i32) -> (i32, i32) {
    %c0_i32 = arith.constant 0 : i32
    %c0_i32_0 = arith.constant 0 : i32
    return %c0_i32, %arg0 : i32, i32
  }
  func.func @transform_6(%arg0: i32) -> (i32, i32) {
    %c0_i32 = arith.constant 0 : i32
    %c0_i32_0 = arith.constant 0 : i32
    return %c0_i32, %arg0 : i32, i32
  }
}

module attributes {stable_mosaic.version = 11 : i64} {
  func.func @_conv_pool_kernel(%arg0: i32, %arg1: memref<16x150xbf16, #tpu.memory_space<vmem>>, %arg2: memref<16x1xf32, #tpu.memory_space<vmem>>, %arg3: memref<150x128xbf16, #tpu.memory_space<vmem>>, %arg4: memref<150x128xbf16, #tpu.memory_space<vmem>>, %arg5: memref<150x128xbf16, #tpu.memory_space<vmem>>, %arg6: memref<150x128xbf16, #tpu.memory_space<vmem>>, %arg7: memref<16x128xbf16, #tpu.memory_space<vmem>>) attributes {dimension_semantics = [#tpu.dimension_semantics<parallel>], iteration_bounds = array<i64: 1>, scalar_prefetch = 0 : i64, scratch_operands = 0 : i64, tpu.core_type = #tpu.core_type<tc>, window_params = [{pipeline_mode = #tpu.pipeline_mode<synchronous>, transform_indices = @transform_0, window_bounds = array<i64: 16, 150>}, {pipeline_mode = #tpu.pipeline_mode<synchronous>, transform_indices = @transform_1, window_bounds = array<i64: 16, 1>}, {transform_indices = @transform_2, window_bounds = array<i64: 150, 128>}, {transform_indices = @transform_3, window_bounds = array<i64: 150, 128>}, {transform_indices = @transform_4, window_bounds = array<i64: 150, 128>}, {transform_indices = @transform_5, window_bounds = array<i64: 150, 128>}, {transform_indices = @transform_6, window_bounds = array<i64: 16, 128>}]} {
    %c0 = arith.constant 0 : index
    %c0_0 = arith.constant 0 : index
    %0 = vector.load %arg1[%c0, %c0_0] : memref<16x150xbf16, #tpu.memory_space<vmem>>, vector<16x150xbf16>
    %c0_1 = arith.constant 0 : index
    %c0_2 = arith.constant 0 : index
    %1 = vector.load %arg3[%c0_1, %c0_2] : memref<150x128xbf16, #tpu.memory_space<vmem>>, vector<150x128xbf16>
    %cst = arith.constant dense<0.000000e+00> : vector<16x128xf32>
    %2 = tpu.matmul %0, %1, %cst {dimension_numbers = #tpu.dot_dimension_numbers<[1], [0], [0], [1], [0, 0, 1, 1], [], []>} : vector<16x150xbf16>, vector<150x128xbf16>, vector<16x128xf32> -> vector<16x128xf32>
    %c0_3 = arith.constant 0 : index
    %c0_4 = arith.constant 0 : index
    %3 = vector.load %arg4[%c0_3, %c0_4] : memref<150x128xbf16, #tpu.memory_space<vmem>>, vector<150x128xbf16>
    %cst_5 = arith.constant dense<0.000000e+00> : vector<16x128xf32>
    %4 = tpu.matmul %0, %3, %cst_5 {dimension_numbers = #tpu.dot_dimension_numbers<[1], [0], [0], [1], [0, 0, 1, 1], [], []>} : vector<16x150xbf16>, vector<150x128xbf16>, vector<16x128xf32> -> vector<16x128xf32>
    %5 = arith.maximumf %2, %4 : vector<16x128xf32>
    %c0_6 = arith.constant 0 : index
    %c0_7 = arith.constant 0 : index
    %6 = vector.load %arg5[%c0_6, %c0_7] : memref<150x128xbf16, #tpu.memory_space<vmem>>, vector<150x128xbf16>
    %cst_8 = arith.constant dense<0.000000e+00> : vector<16x128xf32>
    %7 = tpu.matmul %0, %6, %cst_8 {dimension_numbers = #tpu.dot_dimension_numbers<[1], [0], [0], [1], [0, 0, 1, 1], [], []>} : vector<16x150xbf16>, vector<150x128xbf16>, vector<16x128xf32> -> vector<16x128xf32>
    %8 = arith.maximumf %5, %7 : vector<16x128xf32>
    %c0_9 = arith.constant 0 : index
    %c0_10 = arith.constant 0 : index
    %9 = vector.load %arg6[%c0_9, %c0_10] : memref<150x128xbf16, #tpu.memory_space<vmem>>, vector<150x128xbf16>
    %cst_11 = arith.constant dense<0.000000e+00> : vector<16x128xf32>
    %10 = tpu.matmul %0, %9, %cst_11 {dimension_numbers = #tpu.dot_dimension_numbers<[1], [0], [0], [1], [0, 0, 1, 1], [], []>} : vector<16x150xbf16>, vector<150x128xbf16>, vector<16x128xf32> -> vector<16x128xf32>
    %11 = arith.maximumf %8, %10 : vector<16x128xf32>
    %c0_12 = arith.constant 0 : index
    %c0_13 = arith.constant 0 : index
    %12 = vector.load %arg2[%c0_12, %c0_13] : memref<16x1xf32, #tpu.memory_space<vmem>>, vector<16x1xf32>
    %13 = vector.broadcast %12 : vector<16x1xf32> to vector<16x128xf32>
    %14 = arith.addf %11, %13 : vector<16x128xf32>
    %cst_14 = arith.constant 0.000000e+00 : f32
    %15 = vector.broadcast %cst_14 : f32 to vector<16x128xf32>
    %16 = arith.maximumf %14, %15 : vector<16x128xf32>
    %17 = arith.truncf %16 : vector<16x128xf32> to vector<16x128xbf16>
    %c0_15 = arith.constant 0 : index
    %c0_16 = arith.constant 0 : index
    %18 = vector.load %arg7[%c0_15, %c0_16] : memref<16x128xbf16, #tpu.memory_space<vmem>>, vector<16x128xbf16>
    tpu.vector_store %arg7[%c0_15, %c0_16], %17 {strides = array<i32>} : memref<16x128xbf16, #tpu.memory_space<vmem>>, vector<16x128xbf16>,
    return
  }
  func.func @transform_0(%arg0: i32) -> (i32, i32) {
    %c0_i32 = arith.constant 0 : i32
    %c0_i32_0 = arith.constant 0 : i32
    %c0_i32_1 = arith.constant 0 : i32
    return %c0_i32, %c0_i32_0 : i32, i32
  }
  func.func @transform_1(%arg0: i32) -> (i32, i32) {
    %c0_i32 = arith.constant 0 : i32
    %c0_i32_0 = arith.constant 0 : i32
    %c0_i32_1 = arith.constant 0 : i32
    return %c0_i32, %c0_i32_0 : i32, i32
  }
  func.func @transform_2(%arg0: i32) -> (i32, i32) {
    %c0_i32 = arith.constant 0 : i32
    %c0_i32_0 = arith.constant 0 : i32
    return %c0_i32, %arg0 : i32, i32
  }
  func.func @transform_3(%arg0: i32) -> (i32, i32) {
    %c0_i32 = arith.constant 0 : i32
    %c0_i32_0 = arith.constant 0 : i32
    return %c0_i32, %arg0 : i32, i32
  }
  func.func @transform_4(%arg0: i32) -> (i32, i32) {
    %c0_i32 = arith.constant 0 : i32
    %c0_i32_0 = arith.constant 0 : i32
    return %c0_i32, %arg0 : i32, i32
  }
  func.func @transform_5(%arg0: i32) -> (i32, i32) {
    %c0_i32 = arith.constant 0 : i32
    %c0_i32_0 = arith.constant 0 : i32
    return %c0_i32, %arg0 : i32, i32
  }
  func.func @transform_6(%arg0: i32) -> (i32, i32) {
    %c0_i32 = arith.constant 0 : i32
    %c0_i32_0 = arith.constant 0 : i32
    return %c0_i32, %arg0 : i32, i32
  }
}

module attributes {stable_mosaic.version = 11 : i64} {
  func.func @_fc_stack_kernel(%arg0: i32, %arg1: memref<16x8x25xbf16, #tpu.memory_space<vmem>>, %arg2: memref<16x25x8xbf16, #tpu.memory_space<vmem>>, %arg3: memref<1x8xf32, #tpu.memory_space<vmem>>, %arg4: memref<8x16xbf16, #tpu.memory_space<vmem>>, %arg5: memref<1x16xf32, #tpu.memory_space<vmem>>, %arg6: memref<16x128xbf16, #tpu.memory_space<vmem>>, %arg7: memref<1x128xf32, #tpu.memory_space<vmem>>, %arg8: memref<8x128xf32, #tpu.memory_space<vmem>>) attributes {dimension_semantics = [#tpu.dimension_semantics<parallel>], iteration_bounds = array<i64: 1>, scalar_prefetch = 0 : i64, scratch_operands = 0 : i64, tpu.core_type = #tpu.core_type<tc>, window_params = [{transform_indices = @transform_0, window_bounds = array<i64: 16, 8, 25>}, {pipeline_mode = #tpu.pipeline_mode<synchronous>, transform_indices = @transform_1, window_bounds = array<i64: 16, 25, 8>}, {pipeline_mode = #tpu.pipeline_mode<synchronous>, transform_indices = @transform_2, window_bounds = array<i64: 1, 8>}, {pipeline_mode = #tpu.pipeline_mode<synchronous>, transform_indices = @transform_3, window_bounds = array<i64: 8, 16>}, {pipeline_mode = #tpu.pipeline_mode<synchronous>, transform_indices = @transform_4, window_bounds = array<i64: 1, 16>}, {pipeline_mode = #tpu.pipeline_mode<synchronous>, transform_indices = @transform_5, window_bounds = array<i64: 16, 128>}, {pipeline_mode = #tpu.pipeline_mode<synchronous>, transform_indices = @transform_6, window_bounds = array<i64: 1, 128>}, {transform_indices = @transform_7, window_bounds = array<i64: 8, 128>}]} {
    %c0 = arith.constant 0 : index
    %c0_0 = arith.constant 0 : index
    %c0_1 = arith.constant 0 : index
    %0 = vector.load %arg1[%c0, %c0_0, %c0_1] : memref<16x8x25xbf16, #tpu.memory_space<vmem>>, vector<1x8x25xbf16>
    %1 = vector.shape_cast %0 : vector<1x8x25xbf16> to vector<8x25xbf16>
    %c0_2 = arith.constant 0 : index
    %c0_3 = arith.constant 0 : index
    %c0_4 = arith.constant 0 : index
    %2 = vector.load %arg2[%c0_2, %c0_3, %c0_4] : memref<16x25x8xbf16, #tpu.memory_space<vmem>>, vector<1x25x8xbf16>
    %3 = vector.shape_cast %2 : vector<1x25x8xbf16> to vector<25x8xbf16>
    %cst = arith.constant dense<0.000000e+00> : vector<8x8xf32>
    %4 = tpu.matmul %1, %3, %cst {dimension_numbers = #tpu.dot_dimension_numbers<[1], [0], [0], [1], [0, 0, 1, 1], [], []>} : vector<8x25xbf16>, vector<25x8xbf16>, vector<8x8xf32> -> vector<8x8xf32>
    %c1 = arith.constant 1 : index
    %c0_5 = arith.constant 0 : index
    %c0_6 = arith.constant 0 : index
    %5 = vector.load %arg1[%c1, %c0_5, %c0_6] : memref<16x8x25xbf16, #tpu.memory_space<vmem>>, vector<1x8x25xbf16>
    %6 = vector.shape_cast %5 : vector<1x8x25xbf16> to vector<8x25xbf16>
    %c1_7 = arith.constant 1 : index
    %c0_8 = arith.constant 0 : index
    %c0_9 = arith.constant 0 : index
    %7 = vector.load %arg2[%c1_7, %c0_8, %c0_9] : memref<16x25x8xbf16, #tpu.memory_space<vmem>>, vector<1x25x8xbf16>
    %8 = vector.shape_cast %7 : vector<1x25x8xbf16> to vector<25x8xbf16>
    %cst_10 = arith.constant dense<0.000000e+00> : vector<8x8xf32>
    %9 = tpu.matmul %6, %8, %cst_10 {dimension_numbers = #tpu.dot_dimension_numbers<[1], [0], [0], [1], [0, 0, 1, 1], [], []>} : vector<8x25xbf16>, vector<25x8xbf16>, vector<8x8xf32> -> vector<8x8xf32>
    %10 = arith.addf %4, %9 : vector<8x8xf32>
    %c2 = arith.constant 2 : index
    %c0_11 = arith.constant 0 : index
    %c0_12 = arith.constant 0 : index
    %11 = vector.load %arg1[%c2, %c0_11, %c0_12] : memref<16x8x25xbf16, #tpu.memory_space<vmem>>, vector<1x8x25xbf16>
    %12 = vector.shape_cast %11 : vector<1x8x25xbf16> to vector<8x25xbf16>
    %c2_13 = arith.constant 2 : index
    %c0_14 = arith.constant 0 : index
    %c0_15 = arith.constant 0 : index
    %13 = vector.load %arg2[%c2_13, %c0_14, %c0_15] : memref<16x25x8xbf16, #tpu.memory_space<vmem>>, vector<1x25x8xbf16>
    %14 = vector.shape_cast %13 : vector<1x25x8xbf16> to vector<25x8xbf16>
    %cst_16 = arith.constant dense<0.000000e+00> : vector<8x8xf32>
    %15 = tpu.matmul %12, %14, %cst_16 {dimension_numbers = #tpu.dot_dimension_numbers<[1], [0], [0], [1], [0, 0, 1, 1], [], []>} : vector<8x25xbf16>, vector<25x8xbf16>, vector<8x8xf32> -> vector<8x8xf32>
    %16 = arith.addf %10, %15 : vector<8x8xf32>
    %c3 = arith.constant 3 : index
    %c0_17 = arith.constant 0 : index
    %c0_18 = arith.constant 0 : index
    %17 = vector.load %arg1[%c3, %c0_17, %c0_18] : memref<16x8x25xbf16, #tpu.memory_space<vmem>>, vector<1x8x25xbf16>
    %18 = vector.shape_cast %17 : vector<1x8x25xbf16> to vector<8x25xbf16>
    %c3_19 = arith.constant 3 : index
    %c0_20 = arith.constant 0 : index
    %c0_21 = arith.constant 0 : index
    %19 = vector.load %arg2[%c3_19, %c0_20, %c0_21] : memref<16x25x8xbf16, #tpu.memory_space<vmem>>, vector<1x25x8xbf16>
    %20 = vector.shape_cast %19 : vector<1x25x8xbf16> to vector<25x8xbf16>
    %cst_22 = arith.constant dense<0.000000e+00> : vector<8x8xf32>
    %21 = tpu.matmul %18, %20, %cst_22 {dimension_numbers = #tpu.dot_dimension_numbers<[1], [0], [0], [1], [0, 0, 1, 1], [], []>} : vector<8x25xbf16>, vector<25x8xbf16>, vector<8x8xf32> -> vector<8x8xf32>
    %22 = arith.addf %16, %21 : vector<8x8xf32>
    %c4 = arith.constant 4 : index
    %c0_23 = arith.constant 0 : index
    %c0_24 = arith.constant 0 : index
    %23 = vector.load %arg1[%c4, %c0_23, %c0_24] : memref<16x8x25xbf16, #tpu.memory_space<vmem>>, vector<1x8x25xbf16>
    %24 = vector.shape_cast %23 : vector<1x8x25xbf16> to vector<8x25xbf16>
    %c4_25 = arith.constant 4 : index
    %c0_26 = arith.constant 0 : index
    %c0_27 = arith.constant 0 : index
    %25 = vector.load %arg2[%c4_25, %c0_26, %c0_27] : memref<16x25x8xbf16, #tpu.memory_space<vmem>>, vector<1x25x8xbf16>
    %26 = vector.shape_cast %25 : vector<1x25x8xbf16> to vector<25x8xbf16>
    %cst_28 = arith.constant dense<0.000000e+00> : vector<8x8xf32>
    %27 = tpu.matmul %24, %26, %cst_28 {dimension_numbers = #tpu.dot_dimension_numbers<[1], [0], [0], [1], [0, 0, 1, 1], [], []>} : vector<8x25xbf16>, vector<25x8xbf16>, vector<8x8xf32> -> vector<8x8xf32>
    %28 = arith.addf %22, %27 : vector<8x8xf32>
    %c5 = arith.constant 5 : index
    %c0_29 = arith.constant 0 : index
    %c0_30 = arith.constant 0 : index
    %29 = vector.load %arg1[%c5, %c0_29, %c0_30] : memref<16x8x25xbf16, #tpu.memory_space<vmem>>, vector<1x8x25xbf16>
    %30 = vector.shape_cast %29 : vector<1x8x25xbf16> to vector<8x25xbf16>
    %c5_31 = arith.constant 5 : index
    %c0_32 = arith.constant 0 : index
    %c0_33 = arith.constant 0 : index
    %31 = vector.load %arg2[%c5_31, %c0_32, %c0_33] : memref<16x25x8xbf16, #tpu.memory_space<vmem>>, vector<1x25x8xbf16>
    %32 = vector.shape_cast %31 : vector<1x25x8xbf16> to vector<25x8xbf16>
    %cst_34 = arith.constant dense<0.000000e+00> : vector<8x8xf32>
    %33 = tpu.matmul %30, %32, %cst_34 {dimension_numbers = #tpu.dot_dimension_numbers<[1], [0], [0], [1], [0, 0, 1, 1], [], []>} : vector<8x25xbf16>, vector<25x8xbf16>, vector<8x8xf32> -> vector<8x8xf32>
    %34 = arith.addf %28, %33 : vector<8x8xf32>
    %c6 = arith.constant 6 : index
    %c0_35 = arith.constant 0 : index
    %c0_36 = arith.constant 0 : index
    %35 = vector.load %arg1[%c6, %c0_35, %c0_36] : memref<16x8x25xbf16, #tpu.memory_space<vmem>>, vector<1x8x25xbf16>
    %36 = vector.shape_cast %35 : vector<1x8x25xbf16> to vector<8x25xbf16>
    %c6_37 = arith.constant 6 : index
    %c0_38 = arith.constant 0 : index
    %c0_39 = arith.constant 0 : index
    %37 = vector.load %arg2[%c6_37, %c0_38, %c0_39] : memref<16x25x8xbf16, #tpu.memory_space<vmem>>, vector<1x25x8xbf16>
    %38 = vector.shape_cast %37 : vector<1x25x8xbf16> to vector<25x8xbf16>
    %cst_40 = arith.constant dense<0.000000e+00> : vector<8x8xf32>
    %39 = tpu.matmul %36, %38, %cst_40 {dimension_numbers = #tpu.dot_dimension_numbers<[1], [0], [0], [1], [0, 0, 1, 1], [], []>} : vector<8x25xbf16>, vector<25x8xbf16>, vector<8x8xf32> -> vector<8x8xf32>
    %40 = arith.addf %34, %39 : vector<8x8xf32>
    %c7 = arith.constant 7 : index
    %c0_41 = arith.constant 0 : index
    %c0_42 = arith.constant 0 : index
    %41 = vector.load %arg1[%c7, %c0_41, %c0_42] : memref<16x8x25xbf16, #tpu.memory_space<vmem>>, vector<1x8x25xbf16>
    %42 = vector.shape_cast %41 : vector<1x8x25xbf16> to vector<8x25xbf16>
    %c7_43 = arith.constant 7 : index
    %c0_44 = arith.constant 0 : index
    %c0_45 = arith.constant 0 : index
    %43 = vector.load %arg2[%c7_43, %c0_44, %c0_45] : memref<16x25x8xbf16, #tpu.memory_space<vmem>>, vector<1x25x8xbf16>
    %44 = vector.shape_cast %43 : vector<1x25x8xbf16> to vector<25x8xbf16>
    %cst_46 = arith.constant dense<0.000000e+00> : vector<8x8xf32>
    %45 = tpu.matmul %42, %44, %cst_46 {dimension_numbers = #tpu.dot_dimension_numbers<[1], [0], [0], [1], [0, 0, 1, 1], [], []>} : vector<8x25xbf16>, vector<25x8xbf16>, vector<8x8xf32> -> vector<8x8xf32>
    %46 = arith.addf %40, %45 : vector<8x8xf32>
    %c8 = arith.constant 8 : index
    %c0_47 = arith.constant 0 : index
    %c0_48 = arith.constant 0 : index
    %47 = vector.load %arg1[%c8, %c0_47, %c0_48] : memref<16x8x25xbf16, #tpu.memory_space<vmem>>, vector<1x8x25xbf16>
    %48 = vector.shape_cast %47 : vector<1x8x25xbf16> to vector<8x25xbf16>
    %c8_49 = arith.constant 8 : index
    %c0_50 = arith.constant 0 : index
    %c0_51 = arith.constant 0 : index
    %49 = vector.load %arg2[%c8_49, %c0_50, %c0_51] : memref<16x25x8xbf16, #tpu.memory_space<vmem>>, vector<1x25x8xbf16>
    %50 = vector.shape_cast %49 : vector<1x25x8xbf16> to vector<25x8xbf16>
    %cst_52 = arith.constant dense<0.000000e+00> : vector<8x8xf32>
    %51 = tpu.matmul %48, %50, %cst_52 {dimension_numbers = #tpu.dot_dimension_numbers<[1], [0], [0], [1], [0, 0, 1, 1], [], []>} : vector<8x25xbf16>, vector<25x8xbf16>, vector<8x8xf32> -> vector<8x8xf32>
    %52 = arith.addf %46, %51 : vector<8x8xf32>
    %c9 = arith.constant 9 : index
    %c0_53 = arith.constant 0 : index
    %c0_54 = arith.constant 0 : index
    %53 = vector.load %arg1[%c9, %c0_53, %c0_54] : memref<16x8x25xbf16, #tpu.memory_space<vmem>>, vector<1x8x25xbf16>
    %54 = vector.shape_cast %53 : vector<1x8x25xbf16> to vector<8x25xbf16>
    %c9_55 = arith.constant 9 : index
    %c0_56 = arith.constant 0 : index
    %c0_57 = arith.constant 0 : index
    %55 = vector.load %arg2[%c9_55, %c0_56, %c0_57] : memref<16x25x8xbf16, #tpu.memory_space<vmem>>, vector<1x25x8xbf16>
    %56 = vector.shape_cast %55 : vector<1x25x8xbf16> to vector<25x8xbf16>
    %cst_58 = arith.constant dense<0.000000e+00> : vector<8x8xf32>
    %57 = tpu.matmul %54, %56, %cst_58 {dimension_numbers = #tpu.dot_dimension_numbers<[1], [0], [0], [1], [0, 0, 1, 1], [], []>} : vector<8x25xbf16>, vector<25x8xbf16>, vector<8x8xf32> -> vector<8x8xf32>
    %58 = arith.addf %52, %57 : vector<8x8xf32>
    %c10 = arith.constant 10 : index
    %c0_59 = arith.constant 0 : index
    %c0_60 = arith.constant 0 : index
    %59 = vector.load %arg1[%c10, %c0_59, %c0_60] : memref<16x8x25xbf16, #tpu.memory_space<vmem>>, vector<1x8x25xbf16>
    %60 = vector.shape_cast %59 : vector<1x8x25xbf16> to vector<8x25xbf16>
    %c10_61 = arith.constant 10 : index
    %c0_62 = arith.constant 0 : index
    %c0_63 = arith.constant 0 : index
    %61 = vector.load %arg2[%c10_61, %c0_62, %c0_63] : memref<16x25x8xbf16, #tpu.memory_space<vmem>>, vector<1x25x8xbf16>
    %62 = vector.shape_cast %61 : vector<1x25x8xbf16> to vector<25x8xbf16>
    %cst_64 = arith.constant dense<0.000000e+00> : vector<8x8xf32>
    %63 = tpu.matmul %60, %62, %cst_64 {dimension_numbers = #tpu.dot_dimension_numbers<[1], [0], [0], [1], [0, 0, 1, 1], [], []>} : vector<8x25xbf16>, vector<25x8xbf16>, vector<8x8xf32> -> vector<8x8xf32>
    %64 = arith.addf %58, %63 : vector<8x8xf32>
    %c11 = arith.constant 11 : index
    %c0_65 = arith.constant 0 : index
    %c0_66 = arith.constant 0 : index
    %65 = vector.load %arg1[%c11, %c0_65, %c0_66] : memref<16x8x25xbf16, #tpu.memory_space<vmem>>, vector<1x8x25xbf16>
    %66 = vector.shape_cast %65 : vector<1x8x25xbf16> to vector<8x25xbf16>
    %c11_67 = arith.constant 11 : index
    %c0_68 = arith.constant 0 : index
    %c0_69 = arith.constant 0 : index
    %67 = vector.load %arg2[%c11_67, %c0_68, %c0_69] : memref<16x25x8xbf16, #tpu.memory_space<vmem>>, vector<1x25x8xbf16>
    %68 = vector.shape_cast %67 : vector<1x25x8xbf16> to vector<25x8xbf16>
    %cst_70 = arith.constant dense<0.000000e+00> : vector<8x8xf32>
    %69 = tpu.matmul %66, %68, %cst_70 {dimension_numbers = #tpu.dot_dimension_numbers<[1], [0], [0], [1], [0, 0, 1, 1], [], []>} : vector<8x25xbf16>, vector<25x8xbf16>, vector<8x8xf32> -> vector<8x8xf32>
    %70 = arith.addf %64, %69 : vector<8x8xf32>
    %c12 = arith.constant 12 : index
    %c0_71 = arith.constant 0 : index
    %c0_72 = arith.constant 0 : index
    %71 = vector.load %arg1[%c12, %c0_71, %c0_72] : memref<16x8x25xbf16, #tpu.memory_space<vmem>>, vector<1x8x25xbf16>
    %72 = vector.shape_cast %71 : vector<1x8x25xbf16> to vector<8x25xbf16>
    %c12_73 = arith.constant 12 : index
    %c0_74 = arith.constant 0 : index
    %c0_75 = arith.constant 0 : index
    %73 = vector.load %arg2[%c12_73, %c0_74, %c0_75] : memref<16x25x8xbf16, #tpu.memory_space<vmem>>, vector<1x25x8xbf16>
    %74 = vector.shape_cast %73 : vector<1x25x8xbf16> to vector<25x8xbf16>
    %cst_76 = arith.constant dense<0.000000e+00> : vector<8x8xf32>
    %75 = tpu.matmul %72, %74, %cst_76 {dimension_numbers = #tpu.dot_dimension_numbers<[1], [0], [0], [1], [0, 0, 1, 1], [], []>} : vector<8x25xbf16>, vector<25x8xbf16>, vector<8x8xf32> -> vector<8x8xf32>
    %76 = arith.addf %70, %75 : vector<8x8xf32>
    %c13 = arith.constant 13 : index
    %c0_77 = arith.constant 0 : index
    %c0_78 = arith.constant 0 : index
    %77 = vector.load %arg1[%c13, %c0_77, %c0_78] : memref<16x8x25xbf16, #tpu.memory_space<vmem>>, vector<1x8x25xbf16>
    %78 = vector.shape_cast %77 : vector<1x8x25xbf16> to vector<8x25xbf16>
    %c13_79 = arith.constant 13 : index
    %c0_80 = arith.constant 0 : index
    %c0_81 = arith.constant 0 : index
    %79 = vector.load %arg2[%c13_79, %c0_80, %c0_81] : memref<16x25x8xbf16, #tpu.memory_space<vmem>>, vector<1x25x8xbf16>
    %80 = vector.shape_cast %79 : vector<1x25x8xbf16> to vector<25x8xbf16>
    %cst_82 = arith.constant dense<0.000000e+00> : vector<8x8xf32>
    %81 = tpu.matmul %78, %80, %cst_82 {dimension_numbers = #tpu.dot_dimension_numbers<[1], [0], [0], [1], [0, 0, 1, 1], [], []>} : vector<8x25xbf16>, vector<25x8xbf16>, vector<8x8xf32> -> vector<8x8xf32>
    %82 = arith.addf %76, %81 : vector<8x8xf32>
    %c14 = arith.constant 14 : index
    %c0_83 = arith.constant 0 : index
    %c0_84 = arith.constant 0 : index
    %83 = vector.load %arg1[%c14, %c0_83, %c0_84] : memref<16x8x25xbf16, #tpu.memory_space<vmem>>, vector<1x8x25xbf16>
    %84 = vector.shape_cast %83 : vector<1x8x25xbf16> to vector<8x25xbf16>
    %c14_85 = arith.constant 14 : index
    %c0_86 = arith.constant 0 : index
    %c0_87 = arith.constant 0 : index
    %85 = vector.load %arg2[%c14_85, %c0_86, %c0_87] : memref<16x25x8xbf16, #tpu.memory_space<vmem>>, vector<1x25x8xbf16>
    %86 = vector.shape_cast %85 : vector<1x25x8xbf16> to vector<25x8xbf16>
    %cst_88 = arith.constant dense<0.000000e+00> : vector<8x8xf32>
    %87 = tpu.matmul %84, %86, %cst_88 {dimension_numbers = #tpu.dot_dimension_numbers<[1], [0], [0], [1], [0, 0, 1, 1], [], []>} : vector<8x25xbf16>, vector<25x8xbf16>, vector<8x8xf32> -> vector<8x8xf32>
    %88 = arith.addf %82, %87 : vector<8x8xf32>
    %c15 = arith.constant 15 : index
    %c0_89 = arith.constant 0 : index
    %c0_90 = arith.constant 0 : index
    %89 = vector.load %arg1[%c15, %c0_89, %c0_90] : memref<16x8x25xbf16, #tpu.memory_space<vmem>>, vector<1x8x25xbf16>
    %90 = vector.shape_cast %89 : vector<1x8x25xbf16> to vector<8x25xbf16>
    %c15_91 = arith.constant 15 : index
    %c0_92 = arith.constant 0 : index
    %c0_93 = arith.constant 0 : index
    %91 = vector.load %arg2[%c15_91, %c0_92, %c0_93] : memref<16x25x8xbf16, #tpu.memory_space<vmem>>, vector<1x25x8xbf16>
    %92 = vector.shape_cast %91 : vector<1x25x8xbf16> to vector<25x8xbf16>
    %cst_94 = arith.constant dense<0.000000e+00> : vector<8x8xf32>
    %93 = tpu.matmul %90, %92, %cst_94 {dimension_numbers = #tpu.dot_dimension_numbers<[1], [0], [0], [1], [0, 0, 1, 1], [], []>} : vector<8x25xbf16>, vector<25x8xbf16>, vector<8x8xf32> -> vector<8x8xf32>
    %94 = arith.addf %88, %93 : vector<8x8xf32>
    %c0_95 = arith.constant 0 : index
    %c0_96 = arith.constant 0 : index
    %95 = vector.load %arg3[%c0_95, %c0_96] : memref<1x8xf32, #tpu.memory_space<vmem>>, vector<1x8xf32>
    %96 = vector.broadcast %95 : vector<1x8xf32> to vector<8x8xf32>
    %97 = arith.addf %94, %96 : vector<8x8xf32>
    %cst_97 = arith.constant 0.000000e+00 : f32
    %98 = vector.broadcast %cst_97 : f32 to vector<8x8xf32>
    %99 = arith.maximumf %97, %98 : vector<8x8xf32>
    %100 = arith.truncf %99 : vector<8x8xf32> to vector<8x8xbf16>
    %c0_98 = arith.constant 0 : index
    %c0_99 = arith.constant 0 : index
    %101 = vector.load %arg4[%c0_98, %c0_99] : memref<8x16xbf16, #tpu.memory_space<vmem>>, vector<8x16xbf16>
    %cst_100 = arith.constant dense<0.000000e+00> : vector<8x16xf32>
    %102 = tpu.matmul %100, %101, %cst_100 {dimension_numbers = #tpu.dot_dimension_numbers<[1], [0], [0], [1], [0, 0, 1, 1], [], []>} : vector<8x8xbf16>, vector<8x16xbf16>, vector<8x16xf32> -> vector<8x16xf32>
    %c0_101 = arith.constant 0 : index
    %c0_102 = arith.constant 0 : index
    %103 = vector.load %arg5[%c0_101, %c0_102] : memref<1x16xf32, #tpu.memory_space<vmem>>, vector<1x16xf32>
    %104 = vector.broadcast %103 : vector<1x16xf32> to vector<8x16xf32>
    %105 = arith.addf %102, %104 : vector<8x16xf32>
    %cst_103 = arith.constant 0.000000e+00 : f32
    %106 = vector.broadcast %cst_103 : f32 to vector<8x16xf32>
    %107 = arith.maximumf %105, %106 : vector<8x16xf32>
    %108 = arith.truncf %107 : vector<8x16xf32> to vector<8x16xbf16>
    %c0_104 = arith.constant 0 : index
    %c0_105 = arith.constant 0 : index
    %109 = vector.load %arg6[%c0_104, %c0_105] : memref<16x128xbf16, #tpu.memory_space<vmem>>, vector<16x128xbf16>
    %cst_106 = arith.constant dense<0.000000e+00> : vector<8x128xf32>
    %110 = tpu.matmul %108, %109, %cst_106 {dimension_numbers = #tpu.dot_dimension_numbers<[1], [0], [0], [1], [0, 0, 1, 1], [], []>} : vector<8x16xbf16>, vector<16x128xbf16>, vector<8x128xf32> -> vector<8x128xf32>
    %c0_107 = arith.constant 0 : index
    %c0_108 = arith.constant 0 : index
    %111 = vector.load %arg7[%c0_107, %c0_108] : memref<1x128xf32, #tpu.memory_space<vmem>>, vector<1x128xf32>
    %112 = vector.broadcast %111 : vector<1x128xf32> to vector<8x128xf32>
    %113 = arith.addf %110, %112 : vector<8x128xf32>
    %c0_109 = arith.constant 0 : index
    %c0_110 = arith.constant 0 : index
    %114 = vector.load %arg8[%c0_109, %c0_110] : memref<8x128xf32, #tpu.memory_space<vmem>>, vector<8x128xf32>
    tpu.vector_store %arg8[%c0_109, %c0_110], %113 {strides = array<i32>} : memref<8x128xf32, #tpu.memory_space<vmem>>, vector<8x128xf32>,
    return
  }
  func.func @transform_0(%arg0: i32) -> (i32, i32, i32) {
    %c0_i32 = arith.constant 0 : i32
    %c0_i32_0 = arith.constant 0 : i32
    %c0_i32_1 = arith.constant 0 : i32
    return %c0_i32, %arg0, %c0_i32_0 : i32, i32, i32
  }
  func.func @transform_1(%arg0: i32) -> (i32, i32, i32) {
    %c0_i32 = arith.constant 0 : i32
    %c0_i32_0 = arith.constant 0 : i32
    %c0_i32_1 = arith.constant 0 : i32
    %c0_i32_2 = arith.constant 0 : i32
    return %c0_i32, %c0_i32_0, %c0_i32_1 : i32, i32, i32
  }
  func.func @transform_2(%arg0: i32) -> (i32, i32) {
    %c0_i32 = arith.constant 0 : i32
    %c0_i32_0 = arith.constant 0 : i32
    %c0_i32_1 = arith.constant 0 : i32
    return %c0_i32, %c0_i32_0 : i32, i32
  }
  func.func @transform_3(%arg0: i32) -> (i32, i32) {
    %c0_i32 = arith.constant 0 : i32
    %c0_i32_0 = arith.constant 0 : i32
    %c0_i32_1 = arith.constant 0 : i32
    return %c0_i32, %c0_i32_0 : i32, i32
  }
  func.func @transform_4(%arg0: i32) -> (i32, i32) {
    %c0_i32 = arith.constant 0 : i32
    %c0_i32_0 = arith.constant 0 : i32
    %c0_i32_1 = arith.constant 0 : i32
    return %c0_i32, %c0_i32_0 : i32, i32
  }
  func.func @transform_5(%arg0: i32) -> (i32, i32) {
    %c0_i32 = arith.constant 0 : i32
    %c0_i32_0 = arith.constant 0 : i32
    %c0_i32_1 = arith.constant 0 : i32
    return %c0_i32, %c0_i32_0 : i32, i32
  }
  func.func @transform_6(%arg0: i32) -> (i32, i32) {
    %c0_i32 = arith.constant 0 : i32
    %c0_i32_0 = arith.constant 0 : i32
    %c0_i32_1 = arith.constant 0 : i32
    return %c0_i32, %c0_i32_0 : i32, i32
  }
  func.func @transform_7(%arg0: i32) -> (i32, i32) {
    %c0_i32 = arith.constant 0 : i32
    %c0_i32_0 = arith.constant 0 : i32
    return %arg0, %c0_i32 : i32, i32
  }
}

</mosaic_0001>

<bundles_post_ra>
// kernel: net_forward.3
= control target key start
LH: loop header
LB: loop body
LE: loop exit
PB: predicated region body
PF: predicated region fallthrough
CT: control target
= control target key end

     0   :  { %s1431_s21 = smov 0   ;;  %s1433_s22 = smov 0   ;;  %s1638_s0 = inlined_call_operand.vmem [shape: bf16[8,75], index: 0, kind: input, shape index: {}]   ;;  %s1639_s1 = inlined_call_operand.vmem [shape: f32[8,1], index: 1, kind: input, shape index: {}]   ;;  %s1640_s2 = inlined_call_operand.vmem [shape: bf16[75,512], index: 2, kind: input, shape index: {}]   ;;  %s1641_s3 = inlined_call_operand.vmem [shape: bf16[75,512], index: 3, kind: input, shape index: {}]   ;;  %s1642_s4 = inlined_call_operand.vmem [shape: bf16[75,512], index: 4, kind: input, shape index: {}]   ;;  %s1643_s5 = inlined_call_operand.vmem [shape: bf16[75,512], index: 5, kind: input, shape index: {}]   ;;  %s1644_s6 = inlined_call_operand.vmem [shape: bf16[8,512], index: 6, kind: output, shape index: {}]  }
   0x1   :  { %s1435_s23 = smov 0  }
   0x2 LB: > { %s1109_s24 = sadd.s32 4294967295, %s1392_s23   ;;  %s1448_s25 = sadd.s32 1, %s1392_s23   ;;  %s1392_s23 = sphi %s1435_s23, %s1648_s23   ;;  %s1388_s22 = sphi %s1433_s22, %s1647_s22   ;;  %s1384_s21 = sphi %s1431_s21, %s1646_s21  }
   0x3   : > { %s62_s26 = ssub.s32 %s1392_s23, %s1448_s25  ;;  %s65_s27 = sadd.s32 1, %s1388_s22 }
   0x4   : > { %p63_p0 = scmp.eq.s32.totalorder %s62_s26, 0  ;;  %p72_p1 = scmp.ne.s32.totalorder %s1388_s22, %s1384_s21 }
   0x5   : > { %p73_p2 = scmp.eq.s32.totalorder %s1392_s23, 0  ;;  %p1112_p4 = scmp.ge.s32.totalorder %s1392_s23, 2 }
   0x6   : > { %s1457_s28 = scalar_select %p63_p0, %s1388_s22, %s65_s27  }
   0x7   : > { %p1459_p3 = por %p73_p2, %p72_p1  ;;  %208 = sbr.rel (%p1112_p4) target bundleno = 68 (0x44), region = 24 }
   0xc   : > { %211 = sbr.rel (!%p1459_p3) target bundleno = 26 (0x1a), region = 28  ;;  %s213_s30 = sand.u32 (%p1459_p3), 1, %s1388_s22  }
   0xd   : > { %s1294_s7 = sshll.u32 (%p1459_p3), %s1392_s23, 3  ;;  %s1338_s8 = smul.u32 (%p1459_p3), 80, %s213_s30 }
   0xe   : > { %s218_s11 = scalar_lea.vmem (%p1459_p3), %s1640_s2, %s1294_s7 }
   0xf   : > { %v265_v0 = vld [vmem:[%s218_s11] sm:$0xff] (%p1459_p3)  ;;  %v267_v1 = vld [vmem:[%s218_s11 + $0x10] sm:$0xff] (%p1459_p3)  ;;  %s215_s12 = scalar_lea.vmem (%p1459_p3), [#allocation2], %s1338_s8 }
  0x10   : > { %v269_v2 = vld [vmem:[%s218_s11 + $0x20] sm:$0xff] (%p1459_p3)  ;;  %266 = vst [vmem:[%s215_s12] sm:$0xff] (%p1459_p3), %v265_v0  ;;  %v271_v3 = vld [vmem:[%s218_s11 + $0x30] sm:$0xff] (%p1459_p3) }
  0x11   : > { %268 = vst [vmem:[%s215_s12 + $0x8] sm:$0xff] %v267_v1  ;;  %v273_v4 = vld [vmem:[%s218_s11 + $0x40] sm:$0xff]  ;;  %v275_v5 = vld [vmem:[%s218_s11 + $0x50] sm:$0xff] }
  0x12   : > { %270 = vst [vmem:[%s215_s12 + $0x10] sm:$0xff] %v269_v2  ;;  %v277_v6 = vld [vmem:[%s218_s11 + $0x60] sm:$0xff]  ;;  %v279_v7 = vld [vmem:[%s218_s11 + $0x70] sm:$0xff] }
  0x13   : > { %272 = vst [vmem:[%s215_s12 + $0x18] sm:$0xff] %v271_v3  ;;  %v281_v8 = vld [vmem:[%s218_s11 + $0x80] sm:$0xff]  ;;  %v283_v9 = vld [vmem:[%s218_s11 + $0x90] sm:$0xff] }
  0x14   : > { %274 = vst [vmem:[%s215_s12 + $0x20] sm:$0xff] %v273_v4 }
  0x15   : > { %276 = vst [vmem:[%s215_s12 + $0x28] sm:$0xff] %v275_v5 }
  0x16   : > { %278 = vst [vmem:[%s215_s12 + $0x30] sm:$0xff] %v277_v6 }
  0x17   : > { %280 = vst [vmem:[%s215_s12 + $0x38] sm:$0xff] %v279_v7 }
  0x18   : > { %282 = vst [vmem:[%s215_s12 + $0x40] sm:$0xff] %v281_v8 }
  0x19   : > { %284 = vst [vmem:[%s215_s12 + $0x48] sm:$0xff] %v283_v9 }
  0x1a PF: > { %290 = sbr.rel (!%p1459_p3) target bundleno = 40 (0x28), region = 66  ;;  %s292_s13 = sand.u32 (%p1459_p3), 1, %s1388_s22  }
  0x1b   : > { %s1295_s14 = sshll.u32 (%p1459_p3), %s1392_s23, 3  ;;  %s1339_s15 = smul.u32 (%p1459_p3), 80, %s292_s13 }
  0x1c   : > { %s297_s18 = scalar_lea.vmem (%p1459_p3), %s1641_s3, %s1295_s14 }
  0x1d   : > { %v344_v10 = vld [vmem:[%s297_s18] sm:$0xff] (%p1459_p3)  ;;  %v346_v11 = vld [vmem:[%s297_s18 + $0x10] sm:$0xff] (%p1459_p3)  ;;  %s294_s19 = scalar_lea.vmem (%p1459_p3), [#allocation3], %s1339_s15 }
  0x1e   : > { %v348_v12 = vld [vmem:[%s297_s18 + $0x20] sm:$0xff] (%p1459_p3)  ;;  %345 = vst [vmem:[%s294_s19] sm:$0xff] (%p1459_p3), %v344_v10  ;;  %v350_v13 = vld [vmem:[%s297_s18 + $0x30] sm:$0xff] (%p1459_p3) }
  0x1f   : > { %347 = vst [vmem:[%s294_s19 + $0x8] sm:$0xff] %v346_v11  ;;  %v352_v14 = vld [vmem:[%s297_s18 + $0x40] sm:$0xff]  ;;  %v354_v15 = vld [vmem:[%s297_s18 + $0x50] sm:$0xff] }
  0x20   : > { %349 = vst [vmem:[%s294_s19 + $0x10] sm:$0xff] %v348_v12  ;;  %v356_v16 = vld [vmem:[%s297_s18 + $0x60] sm:$0xff]  ;;  %v358_v17 = vld [vmem:[%s297_s18 + $0x70] sm:$0xff] }
  0x21   : > { %351 = vst [vmem:[%s294_s19 + $0x18] sm:$0xff] %v350_v13  ;;  %v360_v18 = vld [vmem:[%s297_s18 + $0x80] sm:$0xff]  ;;  %v362_v19 = vld [vmem:[%s297_s18 + $0x90] sm:$0xff] }
  0x22   : > { %353 = vst [vmem:[%s294_s19 + $0x20] sm:$0xff] %v352_v14 }
  0x23   : > { %355 = vst [vmem:[%s294_s19 + $0x28] sm:$0xff] %v354_v15 }
  0x24   : > { %357 = vst [vmem:[%s294_s19 + $0x30] sm:$0xff] %v356_v16 }
  0x25   : > { %359 = vst [vmem:[%s294_s19 + $0x38] sm:$0xff] %v358_v17 }
  0x26   : > { %361 = vst [vmem:[%s294_s19 + $0x40] sm:$0xff] %v360_v18 }
  0x27   : > { %363 = vst [vmem:[%s294_s19 + $0x48] sm:$0xff] %v362_v19 }
  0x28 PF: > { %369 = sbr.rel (!%p1459_p3) target bundleno = 54 (0x36), region = 104  ;;  %s371_s20 = sand.u32 (%p1459_p3), 1, %s1388_s22  }
  0x29   : > { %s1296_s26 = sshll.u32 (%p1459_p3), %s1392_s23, 3  ;;  %s1340_s27 = smul.u32 (%p1459_p3), 80, %s371_s20 }
  0x2a   : > { %s376_s8 = scalar_lea.vmem (%p1459_p3), %s1642_s4, %s1296_s26 }
  0x2b   : > { %v423_v20 = vld [vmem:[%s376_s8] sm:$0xff] (%p1459_p3)  ;;  %v425_v21 = vld [vmem:[%s376_s8 + $0x10] sm:$0xff] (%p1459_p3)  ;;  %s373_s9 = scalar_lea.vmem (%p1459_p3), [#allocation4], %s1340_s27 }
  0x2c   : > { %v427_v22 = vld [vmem:[%s376_s8 + $0x20] sm:$0xff] (%p1459_p3)  ;;  %424 = vst [vmem:[%s373_s9] sm:$0xff] (%p1459_p3), %v423_v20  ;;  %v429_v23 = vld [vmem:[%s376_s8 + $0x30] sm:$0xff] (%p1459_p3) }
  0x2d   : > { %426 = vst [vmem:[%s373_s9 + $0x8] sm:$0xff] %v425_v21  ;;  %v431_v24 = vld [vmem:[%s376_s8 + $0x40] sm:$0xff]  ;;  %v433_v25 = vld [vmem:[%s376_s8 + $0x50] sm:$0xff] }
  0x2e   : > { %428 = vst [vmem:[%s373_s9 + $0x10] sm:$0xff] %v427_v22  ;;  %v435_v26 = vld [vmem:[%s376_s8 + $0x60] sm:$0xff]  ;;  %v437_v27 = vld [vmem:[%s376_s8 + $0x70] sm:$0xff] }
  0x2f   : > { %430 = vst [vmem:[%s373_s9 + $0x18] sm:$0xff] %v429_v23  ;;  %v439_v28 = vld [vmem:[%s376_s8 + $0x80] sm:$0xff]  ;;  %v441_v29 = vld [vmem:[%s376_s8 + $0x90] sm:$0xff] }
  0x30   : > { %432 = vst [vmem:[%s373_s9 + $0x20] sm:$0xff] %v431_v24 }
  0x31   : > { %434 = vst [vmem:[%s373_s9 + $0x28] sm:$0xff] %v433_v25 }
  0x32   : > { %436 = vst [vmem:[%s373_s9 + $0x30] sm:$0xff] %v435_v26 }
  0x33   : > { %438 = vst [vmem:[%s373_s9 + $0x38] sm:$0xff] %v437_v27 }
  0x34   : > { %440 = vst [vmem:[%s373_s9 + $0x40] sm:$0xff] %v439_v28 }
  0x35   : > { %442 = vst [vmem:[%s373_s9 + $0x48] sm:$0xff] %v441_v29 }
  0x36 PF: > { %448 = sbr.rel (!%p1459_p3) target bundleno = 68 (0x44), region = 142  ;;  %s450_s10 = sand.u32 (%p1459_p3), 1, %s1388_s22  }
  0x37   : > { %s1297_s11 = sshll.u32 (%p1459_p3), %s1392_s23, 3  ;;  %s1341_s12 = smul.u32 (%p1459_p3), 80, %s450_s10 }
  0x38   : > { %s455_s15 = scalar_lea.vmem (%p1459_p3), %s1643_s5, %s1297_s11 }
  0x39   : > { %v502_v30 = vld [vmem:[%s455_s15] sm:$0xff] (%p1459_p3)  ;;  %v504_v31 = vld [vmem:[%s455_s15 + $0x10] sm:$0xff] (%p1459_p3)  ;;  %s452_s16 = scalar_lea.vmem (%p1459_p3), [#allocation5], %s1341_s12 }
  0x3a   : > { %v506_v32 = vld [vmem:[%s455_s15 + $0x20] sm:$0xff] (%p1459_p3)  ;;  %503 = vst [vmem:[%s452_s16] sm:$0xff] (%p1459_p3), %v502_v30  ;;  %v508_v33 = vld [vmem:[%s455_s15 + $0x30] sm:$0xff] (%p1459_p3) }
  0x3b   : > { %505 = vst [vmem:[%s452_s16 + $0x8] sm:$0xff] %v504_v31  ;;  %v510_v34 = vld [vmem:[%s455_s15 + $0x40] sm:$0xff]  ;;  %v512_v35 = vld [vmem:[%s455_s15 + $0x50] sm:$0xff] }
  0x3c   : > { %507 = vst [vmem:[%s452_s16 + $0x10] sm:$0xff] %v506_v32  ;;  %v514_v36 = vld [vmem:[%s455_s15 + $0x60] sm:$0xff]  ;;  %v516_v37 = vld [vmem:[%s455_s15 + $0x70] sm:$0xff] }
  0x3d   : > { %509 = vst [vmem:[%s452_s16 + $0x18] sm:$0xff] %v508_v33  ;;  %v518_v38 = vld [vmem:[%s455_s15 + $0x80] sm:$0xff]  ;;  %v520_v39 = vld [vmem:[%s455_s15 + $0x90] sm:$0xff] }
  0x3e   : > { %511 = vst [vmem:[%s452_s16 + $0x20] sm:$0xff] %v510_v34 }
  0x3f   : > { %513 = vst [vmem:[%s452_s16 + $0x28] sm:$0xff] %v512_v35 }
  0x40   : > { %515 = vst [vmem:[%s452_s16 + $0x30] sm:$0xff] %v514_v36 }
  0x41   : > { %517 = vst [vmem:[%s452_s16 + $0x38] sm:$0xff] %v516_v37 }
  0x42   : > { %519 = vst [vmem:[%s452_s16 + $0x40] sm:$0xff] %v518_v38 }
  0x43   : > { %521 = vst [vmem:[%s452_s16 + $0x48] sm:$0xff] %v520_v39 }
  0x44 PF: > { %p1121_p5 = scmp.ge.s32.totalorder %s1392_s23, 1  ;;  %p526_p6 = scmp.lt.s32.totalorder %s1392_s23, 3 }
  0x46   : > { %p527_p7 = pnand %p1121_p5, %p526_p6 }
  0x47   : > { %s533_s29 = sand.u32 (!%p527_p7), 1, %s1384_s21   ;;  %s1122_s8 = sshll.u32 (!%p527_p7), %s1109_s24, 1 }
  0x48   : > { %530 = sbr.rel (%p527_p7) target bundleno = 265 (0x109), region = 180  ;;  %p600_p8 = scmp.lt.s32.totalorder (!%p527_p7), %s1122_s8, 3 }
  0x49   : > { %s1495_s17 = smul.u32 (!%p527_p7), 80, %s533_s29 }
  0x4b   : > { %s1500_s18 = scalar_lea.vmem (!%p527_p7), [#allocation2], %s1495_s17  ;;  %s1507_s21 = scalar_lea.vmem (!%p527_p7), [#allocation3], %s1495_s17 }
  0x4c   : > { %s1552_s26 = scalar_lea.vmem (!%p527_p7), [#allocation4], %s1495_s17  ;;  %s1559_s27 = scalar_lea.vmem (!%p527_p7), [#allocation5], %s1495_s17 }
  0x4d   : > { %vm669_vm0 = vcmask 1044480   ;;  %vm670_vm1 = vcmask 1045504   ;;  %v1394_v40 = vmov 65535   ;;  %v1158_v43 = vld [vmem:[%s1500_s18 + $0x40] sm:$0xf]  ;;  %vm665_vm2 = vcmask 613376  }
  0x4e   : > { %v671_v41 = vsel %vm669_vm0, 4294967295, %v1394_v40  ;;  %v1307_v44 = vld [vmem:[%s1500_s18 + $0x44] sm:$0x30]  ;;  %v1306_v45 = vld [vmem:[%s1500_s18 + $0x44] sm:$0xf]  ;;  %s1650_s8 = smov (!%p600_p8, %s1122_s8), 3 }
  0x4f   : > { %v1497_v42 = vsel %vm670_vm1, %v671_v41, 0  ;;  %v1159_v46 = vor.u32 %v1307_v44, %v1158_v43  ;;  %v1160_v47 = vld [vmem:[%s1500_s18 + $0x48] sm:$0x30]  ;;  %v1200_v48 = vld [vmem:[%s1507_s21 + $0x40] sm:$0xf]  ;;  %s1123_s9 = sshll.u32 %s1650_s8, 2 }
  0x50   : > { %v1317_v49 = vld [vmem:[%s1507_s21 + $0x44] sm:$0x30]  ;;  %v1163_v50 = vor.u32 %v1306_v45, %v1160_v47  ;;  %v1316_v52 = vld [vmem:[%s1507_s21 + $0x44] sm:$0xf]  ;;  %v1202_v53 = vld [vmem:[%s1507_s21 + $0x48] sm:$0x30]  ;;  %s603_s10 = scalar_lea.vmem %s1644_s6, %s1123_s9 }
  0x51   : > { %v1201_v51 = vor.u32 %v1317_v49, %v1200_v48  ;;  %v1150_v54 = vld [vmem:[%s1500_s18 + $0x30] sm:$0xf]  ;;  %v674_v55 = vand.u32 %v1159_v46, %v1497_v42  ;;  %v1205_v56 = vor.u32 %v1316_v52, %v1202_v53  ;;  %v1305_v57 = vld [vmem:[%s1500_s18 + $0x34] sm:$0xf0]  ;;  %v1304_v58 = vld [vmem:[%s1500_s18 + $0x34] sm:$0xf] }
  0x52   : > { %v1152_v59 = vld [vmem:[%s1500_s18 + $0x38] sm:$0xf0]  ;;  %v677_v60 = vand.u32 %v1163_v50, %v1497_v42  ;;  %v1192_v62 = vld [vmem:[%s1507_s21 + $0x30] sm:$0xf]  ;;  %v1315_v63 = vld [vmem:[%s1507_s21 + $0x34] sm:$0xf0]  ;;  %v1151_v2 = vor.u32 %v1305_v57, %v1150_v54 }
  0x53   : > { %v764_v61 = vand.u32 %v1201_v51, %v1497_v42  ;;  %v1314_v0 = vld [vmem:[%s1507_s21 + $0x34] sm:$0xf]  ;;  %682 = vmatpush.bf16.msra.mxu0 %v674_v55  ;;  %v767_v1 = vand.u32 %v1205_v56, %v1497_v42  ;;  %v1194_v3 = vld [vmem:[%s1507_s21 + $0x38] sm:$0xf0]  ;;  %v1155_v4 = vor.u32 %v1304_v58, %v1152_v59  ;;  %v1193_v5 = vor.u32 %v1315_v63, %v1192_v62  ;;  %v1142_v6 = vld [vmem:[%s1500_s18 + $0x20] sm:$0xf] }
  0x54   : > { %695 = vmatpush.bf16.msra.mxu1 %v677_v60  ;;  %v1303_v7 = vld [vmem:[%s1500_s18 + $0x24] sm:$0xf0]  ;;  %v1302_v8 = vld [vmem:[%s1500_s18 + $0x24] sm:$0xf]  ;;  %v1197_v9 = vor.u32 %v1314_v0, %v1194_v3  ;;  %v1144_v10 = vld [vmem:[%s1500_s18 + $0x28] sm:$0xf0] }
  0x55   : > { %772 = vmatpush.bf16.msra.mxu2 %v764_v61  ;;  %785 = vmatpush.bf16.msra.mxu3 %v767_v1  ;;  %v1184_v11 = vld [vmem:[%s1507_s21 + $0x20] sm:$0xf]  ;;  %v1313_v12 = vld [vmem:[%s1507_s21 + $0x24] sm:$0xf0]  ;;  %v1312_v13 = vld [vmem:[%s1507_s21 + $0x24] sm:$0xf]  ;;  %v1143_v15 = vor.u32 %v1303_v7, %v1142_v6  ;;  %v1147_v17 = vor.u32 %v1302_v8, %v1144_v10 }
  0x56   : > { %v1186_v14 = vld [vmem:[%s1507_s21 + $0x28] sm:$0xf0]  ;;  %v1134_v16 = vld [vmem:[%s1500_s18 + $0x10] sm:$0xf]  ;;  %v1185_v18 = vor.u32 %v1313_v12, %v1184_v11  ;;  %v1301_v19 = vld [vmem:[%s1500_s18 + $0x14] sm:$0xf0] }
  0x57   : > { %683 = vmatpush.bf16.msra.mxu0 %v1151_v2  ;;  %v1300_v20 = vld [vmem:[%s1500_s18 + $0x14] sm:$0xf]  ;;  %v1136_v21 = vld [vmem:[%s1500_s18 + $0x18] sm:$0xf0]  ;;  %v1189_v22 = vor.u32 %v1312_v13, %v1186_v14  ;;  %v1176_v23 = vld [vmem:[%s1507_s21 + $0x10] sm:$0xf]  ;;  %v1135_v29 = vor.u32 %v1301_v19, %v1134_v16 }
  0x58   : > { %696 = vmatpush.bf16.msra.mxu1 %v1155_v4  ;;  %v1311_v24 = vld [vmem:[%s1507_s21 + $0x14] sm:$0xf0]  ;;  %v1310_v25 = vld [vmem:[%s1507_s21 + $0x14] sm:$0xf]  ;;  %v1178_v26 = vld [vmem:[%s1507_s21 + $0x18] sm:$0xf0]  ;;  %v1139_v35 = vor.u32 %v1300_v20, %v1136_v21 }
  0x59   : > { %773 = vmatpush.bf16.msra.mxu2 %v1193_v5  ;;  %786 = vmatpush.bf16.msra.mxu3 %v1197_v9  ;;  %v1126_v27 = vld [vmem:[%s1500_s18] sm:$0xf]  ;;  %v1299_v28 = vld [vmem:[%s1500_s18 + $0x4] sm:$0xf0]  ;;  %v1298_v30 = vld [vmem:[%s1500_s18 + $0x4] sm:$0xf]  ;;  %v1177_v36 = vor.u32 %v1311_v24, %v1176_v23  ;;  %v1181_v41 = vor.u32 %v1310_v25, %v1178_v26 }
  0x5a   : > { %v1128_v31 = vld [vmem:[%s1500_s18 + $0x8] sm:$0xf0]  ;;  %v1168_v32 = vld [vmem:[%s1507_s21] sm:$0xf]  ;;  %v1309_v33 = vld [vmem:[%s1507_s21 + $0x4] sm:$0xf0]  ;;  %v1127_v53 = vor.u32 %v1299_v28, %v1126_v27 }
  0x5b   : > { %684 = vmatpush.bf16.msra.mxu0 %v1143_v15  ;;  %v981_v34 = vld [vmem:[%s1639_s1] sm:$0xff]  ;;  %v1327_v39 = vld [vmem:[%s1552_s26 + $0x44] sm:$0x30]  ;;  %v1244_v44 = vld [vmem:[%s1552_s26 + $0x48] sm:$0x30]  ;;  %v1395_v47 = vmov 0   ;;  %v1131_v55 = vor.u32 %v1298_v30, %v1128_v31  ;;  %v1169_v56 = vor.u32 %v1309_v33, %v1168_v32 }
  0x5c   : > { %697 = vmatpush.bf16.msra.mxu1 %v1147_v17  ;;  %v1308_v37 = vld [vmem:[%s1507_s21 + $0x4] sm:$0xf]  ;;  %v1242_v38 = vld [vmem:[%s1552_s26 + $0x40] sm:$0xf]  ;;  %v1337_v46 = vld [vmem:[%s1559_s27 + $0x44] sm:$0x30]  ;;  %1369 = vset.pattern.permute.xlu0 %v1395_v47 }
  0x5d   : > { %774 = vmatpush.bf16.msra.mxu2 %v1185_v18  ;;  %v1326_v40 = vld [vmem:[%s1552_s26 + $0x44] sm:$0xf]  ;;  %787 = vmatpush.bf16.msra.mxu3 %v1189_v22  ;;  %v1243_v43 = vor.u32 %v1327_v39, %v1242_v38  ;;  %v1284_v45 = vld [vmem:[%s1559_s27 + $0x40] sm:$0xf]  ;;  %v1170_v48 = vld [vmem:[%s1507_s21 + $0x8] sm:$0xf0] }
  0x5e   : > { %v1247_v49 = vor.u32 %v1326_v40, %v1244_v44  ;;  %v1285_v50 = vor.u32 %v1337_v46, %v1284_v45  ;;  %v1336_v51 = vld [vmem:[%s1559_s27 + $0x44] sm:$0xf]  ;;  %v1286_v52 = vld [vmem:[%s1559_s27 + $0x48] sm:$0x30]  ;;  %984 = vperm.xlu0 %1369, %v981_v34   ;;  %v1173_v57 = vor.u32 %v1308_v37, %v1170_v48  ;;  %v1572_v61 = vld [vmem:[%s1638_s0] sm:$0xf] }
  0x5f   : > { %685 = vmatpush.bf16.msra.mxu0 %v1135_v29  ;;  %v1289_v54 = vor.u32 %v1336_v51, %v1286_v52  ;;  %v856_v58 = vand.u32 %v1243_v43, %v1497_v42  ;;  %v1234_v62 = vld [vmem:[%s1552_s26 + $0x30] sm:$0xf]  ;;  %v1325_v63 = vld [vmem:[%s1552_s26 + $0x34] sm:$0xf0]  ;;  %v1324_v0 = vld [vmem:[%s1552_s26 + $0x34] sm:$0xf] }
  0x60   : > { %698 = vmatpush.bf16.msra.mxu1 %v1139_v35  ;;  %v859_v59 = vand.u32 %v1247_v49, %v1497_v42  ;;  %v948_v60 = vand.u32 %v1285_v50, %v1497_v42  ;;  %v1236_v2 = vld [vmem:[%s1552_s26 + $0x38] sm:$0xf0]  ;;  %v1276_v3 = vld [vmem:[%s1559_s27 + $0x30] sm:$0xf]  ;;  %v1335_v4 = vld [vmem:[%s1559_s27 + $0x34] sm:$0xf0]  ;;  %v1235_v7 = vor.u32 %v1325_v63, %v1234_v62 }
  0x61   : > { %775 = vmatpush.bf16.msra.mxu2 %v1177_v36  ;;  %788 = vmatpush.bf16.msra.mxu3 %v1181_v41  ;;  %v951_v1 = vand.u32 %v1289_v54, %v1497_v42  ;;  %v1334_v5 = vld [vmem:[%s1559_s27 + $0x34] sm:$0xf]  ;;  %v1278_v6 = vld [vmem:[%s1559_s27 + $0x38] sm:$0xf0]  ;;  %v1239_v42 = vor.u32 %v1324_v0, %v1236_v2  ;;  %v1277_v8 = vor.u32 %v1335_v4, %v1276_v3  ;;  %v1226_v9 = vld [vmem:[%s1552_s26 + $0x20] sm:$0xf] }
  0x62   : > { %v1323_v10 = vld [vmem:[%s1552_s26 + $0x24] sm:$0xf0]  ;;  %v1322_v11 = vld [vmem:[%s1552_s26 + $0x24] sm:$0xf]  ;;  %v1281_v12 = vor.u32 %v1334_v5, %v1278_v6  ;;  %v1228_v13 = vld [vmem:[%s1552_s26 + $0x28] sm:$0xf0] }
  0x63   : > { %686 = vmatpush.bf16.msra.mxu0 %v1127_v53  ;;  %v1268_v14 = vld [vmem:[%s1559_s27 + $0x20] sm:$0xf]  ;;  %v1333_v15 = vld [vmem:[%s1559_s27 + $0x24] sm:$0xf0]  ;;  %v1332_v16 = vld [vmem:[%s1559_s27 + $0x24] sm:$0xf]  ;;  %v1227_v18 = vor.u32 %v1323_v10, %v1226_v9  ;;  %v1231_v19 = vor.u32 %v1322_v11, %v1228_v13 }
  0x64   : > { %699 = vmatpush.bf16.msra.mxu1 %v1131_v55  ;;  %v1270_v17 = vld [vmem:[%s1559_s27 + $0x28] sm:$0xf0]  ;;  %v1269_v20 = vor.u32 %v1333_v15, %v1268_v14  ;;  %v1218_v21 = vld [vmem:[%s1552_s26 + $0x10] sm:$0xf]  ;;  %v1321_v22 = vld [vmem:[%s1552_s26 + $0x14] sm:$0xf0] }
  0x65   : > { %776 = vmatpush.bf16.msra.mxu2 %v1169_v56  ;;  %789 = vmatpush.bf16.msra.mxu3 %v1173_v57  ;;  %v1320_v23 = vld [vmem:[%s1552_s26 + $0x14] sm:$0xf]  ;;  %v1273_v24 = vor.u32 %v1332_v16, %v1270_v17  ;;  %v1220_v25 = vld [vmem:[%s1552_s26 + $0x18] sm:$0xf0]  ;;  %v1260_v26 = vld [vmem:[%s1559_s27 + $0x10] sm:$0xf]  ;;  %v1219_v30 = vor.u32 %v1321_v22, %v1218_v21 }
  0x66   : > { %1164 = vmatmul.msk.bf16.vlgmr.msra.gmra.mxu0 %vm665_vm2, %v1572_v61  ;;  %v1331_v27 = vld [vmem:[%s1559_s27 + $0x14] sm:$0xf0]  ;;  %v1330_v28 = vld [vmem:[%s1559_s27 + $0x14] sm:$0xf]  ;;  %v1262_v29 = vld [vmem:[%s1559_s27 + $0x18] sm:$0xf0]  ;;  %v1223_v31 = vor.u32 %v1320_v23, %v1220_v25 }
  0x67   : > { %864 = vmatpush.bf16.msrb.mxu0 %v856_v58  ;;  %1165 = vmatmul.msk.bf16.vlgmr.msra.gmra.mxu1 %vm665_vm2, %v1572_v61  ;;  %v1261_v32 = vor.u32 %v1331_v27, %v1260_v26  ;;  %v1210_v33 = vld [vmem:[%s1552_s26] sm:$0xf]  ;;  %v1319_v34 = vld [vmem:[%s1552_s26 + $0x4] sm:$0xf0]  ;;  %v1318_v35 = vld [vmem:[%s1552_s26 + $0x4] sm:$0xf]  ;;  %v1265_v36 = vor.u32 %v1330_v28, %v1262_v29 }
  0x68   : > { %877 = vmatpush.bf16.msrb.mxu1 %v859_v59  ;;  %1206 = vmatmul.msk.bf16.vlgmr.msra.gmra.mxu2 %vm665_vm2, %v1572_v61  ;;  %v1212_v37 = vld [vmem:[%s1552_s26 + $0x8] sm:$0xf0]  ;;  %v1252_v38 = vld [vmem:[%s1559_s27] sm:$0xf]  ;;  %v1329_v39 = vld [vmem:[%s1559_s27 + $0x4] sm:$0xf0]  ;;  %v1211_v43 = vor.u32 %v1319_v34, %v1210_v33 }
  0x69   : > { %956 = vmatpush.bf16.msrb.mxu2 %v948_v60  ;;  %969 = vmatpush.bf16.msrb.mxu3 %v951_v1  ;;  %v1328_v40 = vld [vmem:[%s1559_s27 + $0x4] sm:$0xf]  ;;  %v1254_v41 = vld [vmem:[%s1559_s27 + $0x8] sm:$0xf0]  ;;  %v1215_v44 = vor.u32 %v1318_v35, %v1212_v37  ;;  %v1253_v45 = vor.u32 %v1329_v39, %v1252_v38 }
  0x6a   : > { %1207 = vmatmul.msk.bf16.vlgmr.msra.gmra.mxu3 %vm665_vm2, %v1572_v61  ;;  %v1257_v46 = vor.u32 %v1328_v40, %v1254_v41 }
  0x6b   : > { %865 = vmatpush.bf16.msrb.mxu0 %v1235_v7 }
  0x6c   : > { %878 = vmatpush.bf16.msrb.mxu1 %v1239_v42 }
  0x6d   : > { %957 = vmatpush.bf16.msrb.mxu2 %v1277_v8  ;;  %970 = vmatpush.bf16.msrb.mxu3 %v1281_v12 }
  0x6f   : > { %866 = vmatpush.bf16.msrb.mxu0 %v1227_v18 }
  0x70   : > { %879 = vmatpush.bf16.msrb.mxu1 %v1231_v19 }
  0x71   : > { %958 = vmatpush.bf16.msrb.mxu2 %v1269_v20  ;;  %971 = vmatpush.bf16.msrb.mxu3 %v1273_v24 }
  0x73   : > { %867 = vmatpush.bf16.msrb.mxu0 %v1219_v30 }
  0x74   : > { %880 = vmatpush.bf16.msrb.mxu1 %v1223_v31 }
  0x75   : > { %959 = vmatpush.bf16.msrb.mxu2 %v1261_v32  ;;  %972 = vmatpush.bf16.msrb.mxu3 %v1265_v36 }
  0x77   : > { %868 = vmatpush.bf16.msrb.mxu0 %v1211_v43 }
  0x78   : > { %881 = vmatpush.bf16.msrb.mxu1 %v1215_v44 }
  0x79   : > { %960 = vmatpush.bf16.msrb.mxu2 %v1253_v45  ;;  %973 = vmatpush.bf16.msrb.mxu3 %v1257_v46 }
  0x7a   : > { %1248 = vmatmul.msk.bf16.vlgmr.msrb.gmra.mxu0 %vm665_vm2, %v1572_v61 }
  0x7b   : > { %1249 = vmatmul.msk.bf16.vlgmr.msrb.gmra.mxu1 %vm665_vm2, %v1572_v61 }
  0x7c   : > { %1290 = vmatmul.msk.bf16.vlgmr.msrb.gmra.mxu2 %vm665_vm2, %v1572_v61  ;;  %1291 = vmatmul.msk.bf16.vlgmr.msrb.gmra.mxu3 %vm665_vm2, %v1572_v61 }
  0xd0   : > { %v985_v63 = vpop.permute.xlu0 %984 }
  0xe3   : > { %v688_v47 = vpop.f32.mrf.mxu0 }
  0xe4   : > { %v701_v48 = vpop.f32.mrf.mxu1 }
  0xeb   : > { %v778_v49 = vpop.f32.mrf.mxu2  ;;  %v690_v51 = vpop.f32.mrf.mxu0 }
  0xec   : > { %v703_v52 = vpop.f32.mrf.mxu1  ;;  %v795_v57 = vmax.f32 %v688_v47, %v778_v49 }
  0xed   : > { %v791_v50 = vpop.f32.mrf.mxu3 }
  0xee   : > { %v796_v58 = vmax.f32 %v701_v48, %v791_v50 }
  0xf3   : > { %v780_v53 = vpop.f32.mrf.mxu2 }
  0xf5   : > { %v793_v54 = vpop.f32.mrf.mxu3 }
  0xf7   : > { %v870_v55 = vpop.f32.mrf.mxu0 }
  0xf8   : > { %v883_v56 = vpop.f32.mrf.mxu1  ;;  %v887_v59 = vmax.f32 %v795_v57, %v870_v55 }
  0xf9   : > { %v888_v60 = vmax.f32 %v796_v58, %v883_v56 }
  0xff   : > { %v962_v62 = vpop.f32.mrf.mxu2  ;;  %v975_v0 = vpop.f32.mrf.mxu3 }
 0x100   : > { %v979_v61 = vmax.f32 %v887_v59, %v962_v62  ;;  %v872_v1 = vpop.f32.mrf.mxu0  ;;  %v980_v2 = vmax.f32 %v888_v60, %v975_v0  ;;  %v885_v3 = vpop.f32.mrf.mxu1 }
 0x102   : > { %v987_v4 = vadd.f32 %v985_v63, %v979_v61  ;;  %v988_v5 = vadd.f32 %v985_v63, %v980_v2 }
 0x104   : > { %v989_v6 = vmax.f32 %v987_v4, 0.0  ;;  %v990_v7 = vmax.f32 %v988_v5, 0.0 }
 0x106   : > { %v991_v42 = vpack.c.bf16 %v990_v7, %v989_v6 }
 0x107   : > { %v964_v8 = vpop.f32.mrf.mxu2  ;;  %v977_v9 = vpop.f32.mrf.mxu3 }
 0x108   : > { %992 = vst [vmem:[%s603_s10] sm:$0xff] %v991_v42 }
 0x109 PF: > { %p13_p9 = scmp.ge.s32.totalorder %s1448_s25, 4   ;;  %s1646_s21 = smov %s1388_s22 }
 0x10a   : > { %s1647_s22 = smov %s1457_s28  ;;  %s1648_s23 = smov %s1448_s25 }
 0x10b   :  { %15 = sbr.rel (!%p13_p9) target bundleno = 2 (0x2), region = 255 }

// kernel: net_forward.4
= control target key start
LH: loop header
LB: loop body
LE: loop exit
PB: predicated region body
PF: predicated region fallthrough
CT: control target
= control target key end

     0   :  { %vm115_vm0 = vcmask 1042432   ;;  %vm111_vm1 = vcmask 179200   ;;  %v699_v35 = vmov 0   ;;  %s890_s2 = inlined_call_operand.vmem [shape: bf16[150,128], index: 2, kind: input, shape index: {}]   ;;  %s891_s3 = inlined_call_operand.vmem [shape: bf16[150,128], index: 3, kind: input, shape index: {}]   ;;  %s892_s4 = inlined_call_operand.vmem [shape: bf16[150,128], index: 4, kind: input, shape index: {}]   ;;  %s893_s0 = inlined_call_operand.vmem [shape: bf16[16,150], index: 0, kind: input, shape index: {}]   ;;  %s894_s5 = inlined_call_operand.vmem [shape: bf16[150,128], index: 5, kind: input, shape index: {}]   ;;  %s895_s1 = inlined_call_operand.vmem [shape: f32[16,1], index: 1, kind: input, shape index: {}]   ;;  %s896_s6 = inlined_call_operand.vmem [shape: bf16[16,128], index: 6, kind: output, shape index: {}]  }
   0x1   :  { %v663_v0 = vld [vmem:[%s890_s2 + $0x38] sm:$0xff]  ;;  %v44_v2 = vld [vmem:[%s890_s2 + $0x48] sm:$0x7]  ;;  %v662_v4 = vld [vmem:[%s890_s2 + $0x30] sm:$0xff]  ;;  %698 = vset.pattern.permute.xlu0 %v699_v35 }
   0x2   :  { %v672_v1 = vld [vmem:[%s891_s3 + $0x38] sm:$0xff]  ;;  %v91_v3 = vunpack.c.l.b16 %v44_v2  ;;  %119 = vmatpush.bf16.msra.mxu0 %v663_v0  ;;  %v274_v5 = vld [vmem:[%s892_s4 + $0x48] sm:$0x7]  ;;  %v671_v7 = vld [vmem:[%s891_s3 + $0x30] sm:$0xff] }
   0x3   :  { %226 = vmatpush.bf16.msra.mxu2 %v672_v1  ;;  %v312_v8 = vunpack.c.l.b16 %v274_v5  ;;  %v664_v11 = vld [vmem:[%s890_s2 + $0x40] sm:$0xff]  ;;  %v661_v12 = vld [vmem:[%s890_s2 + $0x28] sm:$0xff]  ;;  %v681_v15 = vld [vmem:[%s892_s4 + $0x38] sm:$0xff] }
   0x4   :  { %v101_v6 = vpack.c.b16 %v91_v3, %v91_v3  ;;  %v670_v14 = vld [vmem:[%s891_s3 + $0x28] sm:$0xff]  ;;  %v654_v16 = vld [vmem:[%s893_s0 + $0x4] sm:$0xf]  ;;  %v690_v19 = vld [vmem:[%s894_s5 + $0x38] sm:$0xff] }
   0x5   :  { %v322_v10 = vpack.c.b16 %v312_v8, %v312_v8  ;;  %v682_v17 = vld [vmem:[%s892_s4 + $0x40] sm:$0xff]  ;;  %v502_v18 = vld [vmem:[%s893_s0 + $0x8] sm:$0xf0]  ;;  %v680_v23 = vld [vmem:[%s892_s4 + $0x30] sm:$0xff] }
   0x6   :  { %v117_v9 = vsel %vm115_vm0, %v101_v6, 0  ;;  %120 = vmatpush.bf16.msra.mxu0 %v662_v4  ;;  %v779_v20 = vor.u32 %v654_v16, %v502_v18  ;;  %v660_v21 = vld [vmem:[%s890_s2 + $0x20] sm:$0xff]  ;;  %v689_v24 = vld [vmem:[%s894_s5 + $0x30] sm:$0xff]  ;;  %v659_v25 = vld [vmem:[%s890_s2 + $0x18] sm:$0xff] }
   0x7   :  { %139 = vmatpush.bf16.msra.mxu1 %v117_v9  ;;  %227 = vmatpush.bf16.msra.mxu2 %v671_v7  ;;  %v333_v13 = vsel %vm115_vm0, %v322_v10, 0  ;;  %v669_v22 = vld [vmem:[%s891_s3 + $0x20] sm:$0xff]  ;;  %v668_v26 = vld [vmem:[%s891_s3 + $0x18] sm:$0xff]  ;;  %v679_v27 = vld [vmem:[%s892_s4 + $0x28] sm:$0xff] }
   0x8   :  { %355 = vmatpush.bf16.msra.mxu3 %v333_v13  ;;  %v658_v28 = vld [vmem:[%s890_s2 + $0x10] sm:$0xff]  ;;  %v688_v29 = vld [vmem:[%s894_s5 + $0x28] sm:$0xff]  ;;  %v474_v32 = vld [vmem:[%s895_s1] sm:$0xff] }
   0x9   :  { %v165_v30 = vld [vmem:[%s891_s3 + $0x48] sm:$0x7]  ;;  %v667_v33 = vld [vmem:[%s891_s3 + $0x10] sm:$0xff]  ;;  %v678_v34 = vld [vmem:[%s892_s4 + $0x20] sm:$0xff]  ;;  %478 = vperm.xlu0 %698, %v474_v32  }
   0xa   :  { %121 = vmatpush.bf16.msra.mxu0 %v661_v12  ;;  %v383_v31 = vld [vmem:[%s894_s5 + $0x48] sm:$0x7]  ;;  %v687_v36 = vld [vmem:[%s894_s5 + $0x20] sm:$0xff]  ;;  %v203_v37 = vunpack.c.l.b16 %v165_v30  ;;  %v677_v41 = vld [vmem:[%s892_s4 + $0x18] sm:$0xff] }
   0xb   :  { %140 = vmatpush.bf16.msra.mxu1 %v664_v11  ;;  %228 = vmatpush.bf16.msra.mxu2 %v670_v14  ;;  %v421_v38 = vunpack.c.l.b16 %v383_v31  ;;  %v657_v39 = vld [vmem:[%s890_s2 + $0x8] sm:$0xff]  ;;  %v656_v42 = vld [vmem:[%s890_s2] sm:$0xff]  ;;  %v686_v43 = vld [vmem:[%s894_s5 + $0x18] sm:$0xff] }
   0xc   :  { %356 = vmatpush.bf16.msra.mxu3 %v682_v17  ;;  %v666_v40 = vld [vmem:[%s891_s3 + $0x8] sm:$0xff]  ;;  %v213_v44 = vpack.c.b16 %v203_v37, %v203_v37  ;;  %v500_v46 = vld [vmem:[%s893_s0] sm:$0xf]  ;;  %v676_v50 = vld [vmem:[%s892_s4 + $0x10] sm:$0xff] }
   0xd   :  { %v431_v45 = vpack.c.b16 %v421_v38, %v421_v38  ;;  %v655_v47 = vld [vmem:[%s893_s0 + $0x4] sm:$0xf0]  ;;  %v665_v49 = vld [vmem:[%s891_s3] sm:$0xff]  ;;  %v685_v53 = vld [vmem:[%s894_s5 + $0x10] sm:$0xff] }
   0xe   :  { %542 = vmatmul.msk.bf16.vlgmr.msra.gmra.mxu1 %vm111_vm1, %v779_v20  ;;  %122 = vmatpush.bf16.msra.mxu0 %v660_v21  ;;  %v475_v48 = vld [vmem:[%s895_s1 + $0x8] sm:$0xff]  ;;  %v501_v51 = vor.u32 %v655_v47, %v500_v46  ;;  %v224_v52 = vsel %vm115_vm0, %v213_v44, 0  ;;  %v673_v56 = vld [vmem:[%s891_s3 + $0x40] sm:$0xff] }
   0xf   :  { %335 = vmatpush.bf16.msrb.mxu1 %v681_v15  ;;  %229 = vmatpush.bf16.msra.mxu2 %v669_v22  ;;  %v442_v54 = vsel %vm115_vm0, %v431_v45, 0  ;;  %v675_v55 = vld [vmem:[%s892_s4 + $0x8] sm:$0xff]  ;;  %v691_v57 = vld [vmem:[%s894_s5 + $0x40] sm:$0xff] }
  0x10   :  { %444 = vmatpush.bf16.msrb.mxu3 %v690_v19  ;;  %v684_v58 = vld [vmem:[%s894_s5 + $0x8] sm:$0xff]  ;;  %v674_v59 = vld [vmem:[%s892_s4] sm:$0xff] }
  0x11   :  { %616 = vmatmul.msk.bf16.vlgmr.msra.gmra.mxu3 %vm111_vm1, %v779_v20  ;;  %483 = vperm.xlu0 %698, %v475_v48   ;;  %v683_v60 = vld [vmem:[%s894_s5] sm:$0xff] }
  0x12   :  { %123 = vmatpush.bf16.msra.mxu0 %v659_v25 }
  0x13   :  { %336 = vmatpush.bf16.msrb.mxu1 %v680_v23  ;;  %230 = vmatpush.bf16.msra.mxu2 %v668_v26 }
  0x14   :  { %445 = vmatpush.bf16.msrb.mxu3 %v689_v24 }
  0x16   :  { %124 = vmatpush.bf16.msra.mxu0 %v658_v28 }
  0x17   :  { %337 = vmatpush.bf16.msrb.mxu1 %v679_v27  ;;  %231 = vmatpush.bf16.msra.mxu2 %v667_v33 }
  0x18   :  { %446 = vmatpush.bf16.msrb.mxu3 %v688_v29 }
  0x1a   :  { %125 = vmatpush.bf16.msra.mxu0 %v657_v39 }
  0x1b   :  { %338 = vmatpush.bf16.msrb.mxu1 %v678_v34  ;;  %232 = vmatpush.bf16.msra.mxu2 %v666_v40 }
  0x1c   :  { %447 = vmatpush.bf16.msrb.mxu3 %v687_v36 }
  0x1e   :  { %126 = vmatpush.bf16.msra.mxu0 %v656_v42 }
  0x1f   :  { %339 = vmatpush.bf16.msrb.mxu1 %v677_v41  ;;  %233 = vmatpush.bf16.msra.mxu2 %v665_v49 }
  0x20   :  { %448 = vmatpush.bf16.msrb.mxu3 %v686_v43 }
  0x21   :  { %127 = vmatmul.bf16.vlgmr.msra.gmra.mxu0 %v501_v51 }
  0x22   :  { %464 = vmatpush.bf16.msrb.mxu0 %v442_v54  ;;  %234 = vmatmul.bf16.vlgmr.msra.gmra.mxu2 %v501_v51 }
  0x23   :  { %340 = vmatpush.bf16.msrb.mxu1 %v676_v50  ;;  %246 = vmatpush.bf16.msrb.mxu2 %v224_v52 }
  0x24   :  { %449 = vmatpush.bf16.msrb.mxu3 %v685_v53 }
  0x26   :  { %465 = vmatpush.bf16.msrb.mxu0 %v691_v57 }
  0x27   :  { %341 = vmatpush.bf16.msrb.mxu1 %v675_v55  ;;  %247 = vmatpush.bf16.msrb.mxu2 %v673_v56 }
  0x28   :  { %450 = vmatpush.bf16.msrb.mxu3 %v684_v58 }
  0x2b   :  { %342 = vmatpush.bf16.msrb.mxu1 %v674_v59 }
  0x2c   :  { %451 = vmatpush.bf16.msrb.mxu3 %v683_v60 }
  0x2e   :  { %343 = vmatmul.bf16.vlgmr.msrb.gmra.mxu1 %v501_v51 }
  0x2f   :  { %452 = vmatmul.bf16.vlgmr.msrb.gmra.mxu3 %v501_v51 }
  0x31   :  { %653 = vmatmul.msk.bf16.vlgmr.msrb.gmra.mxu0 %vm111_vm1, %v779_v20 }
  0x32   :  { %579 = vmatmul.msk.bf16.vlgmr.msrb.gmra.mxu2 %vm111_vm1, %v779_v20 }
  0x7b   :  { %v479_v13 = vpop.permute.xlu0 %478 }
  0x83   :  { %v484_v29 = vpop.permute.xlu0 %483 }
  0x8b   :  { %v142_v61 = vpop.f32.mrf.mxu1 }
  0x93   :  { %v144_v1 = vpop.f32.mrf.mxu1 }
  0x94   :  { %v358_v62 = vpop.f32.mrf.mxu3 }
  0x9c   :  { %v360_v2 = vpop.f32.mrf.mxu3 }
  0x9e   :  { %v128_v63 = vpop.f32.mrf.mxu0 }
  0x9f   :  { %v143_v9 = vadd.f32 %v142_v61, %v128_v63 }
  0xa5   :  { %v235_v0 = vpop.f32.mrf.mxu2 }
  0xa6   :  { %v130_v3 = vpop.f32.mrf.mxu0 }
  0xa7   :  { %v145_v18 = vadd.f32 %v144_v1, %v130_v3 }
  0xab   :  { %v344_v5 = vpop.f32.mrf.mxu1 }
  0xac   :  { %v359_v12 = vadd.f32 %v358_v62, %v344_v5 }
  0xad   :  { %v237_v4 = vpop.f32.mrf.mxu2 }
  0xae   :  { %v467_v6 = vpop.f32.mrf.mxu0 }
  0xb2   :  { %v453_v7 = vpop.f32.mrf.mxu3 }
  0xb3   :  { %v468_v14 = vadd.f32 %v467_v6, %v453_v7  ;;  %v346_v16 = vpop.f32.mrf.mxu1 }
  0xb4   :  { %v361_v22 = vadd.f32 %v360_v2, %v346_v16 }
  0xb5   :  { %v249_v8 = vpop.f32.mrf.mxu2 }
  0xb6   :  { %v250_v10 = vadd.f32 %v249_v8, %v235_v0  ;;  %v469_v21 = vpop.f32.mrf.mxu0 }
  0xb8   :  { %v254_v11 = vmax.f32 %v143_v9, %v250_v10 }
  0xba   :  { %v363_v15 = vmax.f32 %v254_v11, %v359_v12  ;;  %v455_v20 = vpop.f32.mrf.mxu3 }
  0xbb   :  { %v470_v25 = vadd.f32 %v469_v21, %v455_v20 }
  0xbc   :  { %v472_v23 = vmax.f32 %v363_v15, %v468_v14 }
  0xbd   :  { %v251_v17 = vpop.f32.mrf.mxu2 }
  0xbe   :  { %v252_v19 = vadd.f32 %v251_v17, %v237_v4  ;;  %v486_v27 = vadd.f32 %v479_v13, %v472_v23 }
  0xc0   :  { %v255_v24 = vmax.f32 %v145_v18, %v252_v19  ;;  %v488_v31 = vmax.f32 %v486_v27, 0.0 }
  0xc2   :  { %v364_v26 = vmax.f32 %v255_v24, %v361_v22 }
  0xc4   :  { %v473_v28 = vmax.f32 %v364_v26, %v470_v25 }
  0xc6   :  { %v487_v30 = vadd.f32 %v484_v29, %v473_v28 }
  0xc8   :  { %v489_v32 = vmax.f32 %v487_v30, 0.0 }
  0xca   :  { %v695_v33 = vpack.c.bf16 %v489_v32, %v488_v31 }
  0xcc   :  { %696 = vst [vmem:[%s896_s6] sm:$0xff] %v695_v33  }

// kernel: net_forward.5
= control target key start
LH: loop header
LB: loop body
LE: loop exit
PB: predicated region body
PF: predicated region fallthrough
CT: control target
= control target key end

     0   :  { %vm54_vm0 = vcmask 1043456   ;;  %vm55_vm1 = vcmask 1044480   ;;  %v966_v2 = vmov 65535   ;;  %vm50_vm2 = vcmask 203776   ;;  %s1253_s1 = inlined_call_operand.vmem [shape: bf16[16,25,8], index: 1, kind: input, shape index: {}]   ;;  %s1254_s0 = inlined_call_operand.vmem [shape: bf16[16,8,25], index: 0, kind: input, shape index: {}]   ;;  %s1255_s2 = inlined_call_operand.vmem [shape: f32[1,8], index: 2, kind: input, shape index: {}]   ;;  %s1256_s4 = inlined_call_operand.vmem [shape: f32[1,16], index: 4, kind: input, shape index: {}]   ;;  %s1257_s3 = inlined_call_operand.vmem [shape: bf16[8,16], index: 3, kind: input, shape index: {}]   ;;  %s1258_s5 = inlined_call_operand.vmem [shape: bf16[16,128], index: 5, kind: input, shape index: {}]   ;;  %s1259_s6 = inlined_call_operand.vmem [shape: f32[1,128], index: 6, kind: input, shape index: {}]   ;;  %s1260_s7 = inlined_call_operand.vmem [shape: f32[8,128], index: 7, kind: output, shape index: {}]  }
   0x1   :  { %v715_v0 = vld [vmem:[%s1253_s1 + $0x18] sm:$0xf]  ;;  %v932_v1 = vld [vmem:[%s1253_s1 + $0x18] sm:$0x10]  ;;  %v56_v3 = vsel %vm54_vm0, 4294967295, %v966_v2  ;;  %v931_v17 = vld [vmem:[%s1253_s1 + $0x10] sm:$0xff] }
   0x2   :  { %v716_v4 = vor.u32 %v932_v1, %v715_v0  ;;  %v1014_v5 = vsel %vm55_vm1, %v56_v3, 0  ;;  %v724_v6 = vld [vmem:[%s1253_s1 + $0x8] sm:$0xf]  ;;  %v930_v7 = vld [vmem:[%s1253_s1 + $0x8] sm:$0x10]  ;;  %v929_v18 = vld [vmem:[%s1253_s1] sm:$0xff] }
   0x3   :  { %v725_v8 = vor.u32 %v930_v7, %v724_v6  ;;  %v738_v9 = vld [vmem:[%s1253_s1 + $0x28] sm:$0xf]  ;;  %v934_v10 = vld [vmem:[%s1253_s1 + $0x28] sm:$0x10]  ;;  %v752_v11 = vld [vmem:[%s1253_s1 + $0x38] sm:$0xf] }
   0x4   :  { %v59_v12 = vand.u32 %v716_v4, %v1014_v5  ;;  %v739_v13 = vor.u32 %v934_v10, %v738_v9  ;;  %v936_v14 = vld [vmem:[%s1253_s1 + $0x38] sm:$0x10]  ;;  %v933_v20 = vld [vmem:[%s1253_s1 + $0x20] sm:$0xff]  ;;  %v794_v21 = vld [vmem:[%s1253_s1 + $0x68] sm:$0xf]  ;;  %vm648_vm3 = vcmask 64512  }
   0x5   :  { %v89_v15 = vand.u32 %v725_v8, %v1014_v5  ;;  %v753_v16 = vor.u32 %v936_v14, %v752_v11  ;;  %v942_v22 = vld [vmem:[%s1253_s1 + $0x68] sm:$0x10]  ;;  %v766_v25 = vld [vmem:[%s1253_s1 + $0x48] sm:$0xf]  ;;  %v808_v27 = vld [vmem:[%s1253_s1 + $0x78] sm:$0xf] }
   0x6   :  { %67 = vmatpush.bf16.msra.mxu0 %v59_v12  ;;  %v126_v19 = vand.u32 %v739_v13, %v1014_v5  ;;  %v795_v24 = vor.u32 %v942_v22, %v794_v21  ;;  %v938_v26 = vld [vmem:[%s1253_s1 + $0x48] sm:$0x10]  ;;  %v944_v29 = vld [vmem:[%s1253_s1 + $0x78] sm:$0x10]  ;;  %v780_v30 = vld [vmem:[%s1253_s1 + $0x58] sm:$0xf] }
   0x7   :  { %97 = vmatpush.bf16.msra.mxu1 %v89_v15  ;;  %v164_v23 = vand.u32 %v753_v16, %v1014_v5  ;;  %v767_v28 = vor.u32 %v938_v26, %v766_v25  ;;  %v940_v31 = vld [vmem:[%s1253_s1 + $0x58] sm:$0x10]  ;;  %v935_v32 = vld [vmem:[%s1253_s1 + $0x30] sm:$0xff]  ;;  %v809_v33 = vor.u32 %v944_v29, %v808_v27  ;;  %v704_v35 = vld [vmem:[%s1254_s0 + $0x4] sm:$0xf]  ;;  %vm682_vm4 = vcmask 130048  }
   0x8   :  { %134 = vmatpush.bf16.msra.mxu2 %v126_v19  ;;  %v781_v34 = vor.u32 %v940_v31, %v780_v30  ;;  %v27_v36 = vld [vmem:[%s1254_s0] sm:$0xf]  ;;  %v727_v37 = vld [vmem:[%s1254_s0 + $0x8] sm:$0xf]  ;;  %v278_v38 = vand.u32 %v795_v24, %v1014_v5  ;;  %v741_v40 = vld [vmem:[%s1254_s0 + $0xc] sm:$0xf] }
   0x9   :  { %172 = vmatpush.bf16.msra.mxu3 %v164_v23  ;;  %v202_v39 = vand.u32 %v767_v28, %v1014_v5  ;;  %v316_v41 = vand.u32 %v809_v33, %v1014_v5  ;;  %v937_v42 = vld [vmem:[%s1253_s1 + $0x40] sm:$0xff]  ;;  %v850_v43 = vld [vmem:[%s1253_s1 + $0xa8] sm:$0xf]  ;;  %v950_v45 = vld [vmem:[%s1253_s1 + $0xa8] sm:$0x10] }
   0xa   :  { %68 = vmatpush.bf16.msra.mxu0 %v931_v17  ;;  %v240_v44 = vand.u32 %v781_v34, %v1014_v5  ;;  %v822_v46 = vld [vmem:[%s1253_s1 + $0x88] sm:$0xf]  ;;  %v946_v47 = vld [vmem:[%s1253_s1 + $0x88] sm:$0x10]  ;;  %v851_v48 = vor.u32 %v950_v45, %v850_v43  ;;  %v864_v50 = vld [vmem:[%s1253_s1 + $0xb8] sm:$0xf] }
   0xb   :  { %98 = vmatpush.bf16.msra.mxu1 %v929_v18  ;;  %v823_v49 = vor.u32 %v946_v47, %v822_v46  ;;  %v952_v51 = vld [vmem:[%s1253_s1 + $0xb8] sm:$0x10]  ;;  %v836_v52 = vld [vmem:[%s1253_s1 + $0x98] sm:$0xf]  ;;  %v941_v53 = vld [vmem:[%s1253_s1 + $0x60] sm:$0xff] }
   0xc   :  { %135 = vmatpush.bf16.msra.mxu2 %v933_v20  ;;  %v865_v54 = vor.u32 %v952_v51, %v864_v50  ;;  %v948_v55 = vld [vmem:[%s1253_s1 + $0x98] sm:$0x10]  ;;  %v943_v56 = vld [vmem:[%s1253_s1 + $0x70] sm:$0xff]  ;;  %v430_v57 = vand.u32 %v851_v48, %v1014_v5  ;;  %v945_v63 = vld [vmem:[%s1253_s1 + $0x80] sm:$0xff] }
   0xd   :  { %173 = vmatpush.bf16.msra.mxu3 %v935_v32  ;;  %717 = vmatmul.msk.bf16.vlgmr.msra.gmra.mxu0 %vm50_vm2, %v704_v35  ;;  %v354_v58 = vand.u32 %v823_v49, %v1014_v5  ;;  %v837_v59 = vor.u32 %v948_v55, %v836_v52  ;;  %v939_v60 = vld [vmem:[%s1253_s1 + $0x50] sm:$0xff]  ;;  %v949_v0 = vld [vmem:[%s1253_s1 + $0xa0] sm:$0xff]  ;;  %v878_v1 = vld [vmem:[%s1253_s1 + $0xc8] sm:$0xf] }
   0xe   :  { %210 = vmatpush.bf16.msrb.mxu0 %v202_v39  ;;  %726 = vmatmul.msk.bf16.vlgmr.msra.gmra.mxu1 %vm50_vm2, %v27_v36  ;;  %v468_v61 = vand.u32 %v865_v54, %v1014_v5  ;;  %v954_v2 = vld [vmem:[%s1253_s1 + $0xc8] sm:$0x10]  ;;  %v951_v3 = vld [vmem:[%s1253_s1 + $0xb0] sm:$0xff]  ;;  %v892_v4 = vld [vmem:[%s1253_s1 + $0xd8] sm:$0xf] }
   0xf   :  { %740 = vmatmul.msk.bf16.vlgmr.msra.gmra.mxu2 %vm50_vm2, %v727_v37  ;;  %248 = vmatpush.bf16.msrb.mxu1 %v240_v44  ;;  %v392_v62 = vand.u32 %v837_v59, %v1014_v5  ;;  %v956_v6 = vld [vmem:[%s1253_s1 + $0xd8] sm:$0x10]  ;;  %v947_v7 = vld [vmem:[%s1253_s1 + $0x90] sm:$0xff]  ;;  %v906_v8 = vld [vmem:[%s1253_s1 + $0xe8] sm:$0xf]  ;;  %v879_v10 = vor.u32 %v954_v2, %v878_v1 }
  0x10   :  { %286 = vmatpush.bf16.msrb.mxu2 %v278_v38  ;;  %754 = vmatmul.msk.bf16.vlgmr.msra.gmra.mxu3 %vm50_vm2, %v741_v40  ;;  %v958_v9 = vld [vmem:[%s1253_s1 + $0xe8] sm:$0x10]  ;;  %v920_v11 = vld [vmem:[%s1253_s1 + $0xf8] sm:$0xf]  ;;  %v960_v12 = vld [vmem:[%s1253_s1 + $0xf8] sm:$0x10]  ;;  %v893_v13 = vor.u32 %v956_v6, %v892_v4 }
  0x11   :  { %324 = vmatpush.bf16.msrb.mxu3 %v316_v41  ;;  %v907_v14 = vor.u32 %v958_v9, %v906_v8  ;;  %v921_v15 = vor.u32 %v960_v12, %v920_v11  ;;  %v755_v16 = vld [vmem:[%s1254_s0 + $0x10] sm:$0xf]  ;;  %v506_v17 = vand.u32 %v879_v10, %v1014_v5  ;;  %v769_v18 = vld [vmem:[%s1254_s0 + $0x14] sm:$0xf]  ;;  %v783_v20 = vld [vmem:[%s1254_s0 + $0x18] sm:$0xf] }
  0x12   :  { %211 = vmatpush.bf16.msrb.mxu0 %v937_v42  ;;  %v544_v19 = vand.u32 %v893_v13, %v1014_v5  ;;  %v797_v22 = vld [vmem:[%s1254_s0 + $0x1c] sm:$0xf]  ;;  %v953_v24 = vld [vmem:[%s1253_s1 + $0xc0] sm:$0xff]  ;;  %v955_v25 = vld [vmem:[%s1253_s1 + $0xd0] sm:$0xff] }
  0x13   :  { %249 = vmatpush.bf16.msrb.mxu1 %v939_v60  ;;  %v582_v21 = vand.u32 %v907_v14, %v1014_v5  ;;  %v620_v23 = vand.u32 %v921_v15, %v1014_v5  ;;  %v957_v5 = vld [vmem:[%s1253_s1 + $0xe0] sm:$0xff]  ;;  %v959_v26 = vld [vmem:[%s1253_s1 + $0xf0] sm:$0xff]  ;;  %v839_v29 = vld [vmem:[%s1254_s0 + $0x28] sm:$0xf] }
  0x14   :  { %287 = vmatpush.bf16.msrb.mxu2 %v941_v53  ;;  %v811_v27 = vld [vmem:[%s1254_s0 + $0x20] sm:$0xf]  ;;  %v825_v28 = vld [vmem:[%s1254_s0 + $0x24] sm:$0xf]  ;;  %v853_v30 = vld [vmem:[%s1254_s0 + $0x2c] sm:$0xf] }
  0x15   :  { %325 = vmatpush.bf16.msrb.mxu3 %v943_v56  ;;  %v867_v31 = vld [vmem:[%s1254_s0 + $0x30] sm:$0xf]  ;;  %v881_v32 = vld [vmem:[%s1254_s0 + $0x34] sm:$0xf]  ;;  %v895_v33 = vld [vmem:[%s1254_s0 + $0x38] sm:$0xf] }
  0x16   :  { %362 = vmatpush.bf16.msra.mxu0 %v354_v58  ;;  %v909_v34 = vld [vmem:[%s1254_s0 + $0x3c] sm:$0xf]  ;;  %v643_v46 = vld [vmem:[%s1257_s3] sm:$0xf] }
  0x17   :  { %400 = vmatpush.bf16.msra.mxu1 %v392_v62  ;;  %v653_v47 = vsel %vm54_vm0, %v643_v46, 0 }
  0x18   :  { %438 = vmatpush.bf16.msra.mxu2 %v430_v57 }
  0x19   :  { %476 = vmatpush.bf16.msra.mxu3 %v468_v61  ;;  %v961_v61 = vld [vmem:[%s1258_s5] sm:$0xff] }
  0x1a   :  { %363 = vmatpush.bf16.msra.mxu0 %v945_v63 }
  0x1b   :  { %401 = vmatpush.bf16.msra.mxu1 %v947_v7 }
  0x1c   :  { %439 = vmatpush.bf16.msra.mxu2 %v949_v0 }
  0x1d   :  { %477 = vmatpush.bf16.msra.mxu3 %v951_v3  ;;  %768 = vmatmul.msk.bf16.vlgmr.msrb.gmra.mxu0 %vm50_vm2, %v755_v16 }
  0x1e   :  { %782 = vmatmul.msk.bf16.vlgmr.msrb.gmra.mxu1 %vm50_vm2, %v769_v18  ;;  %514 = vmatpush.bf16.msrb.mxu0 %v506_v17  ;;  %v963_v18 = vld [vmem:[%s1255_s2] ss:$0 sm:$0xff] }
  0x1f   :  { %796 = vmatmul.msk.bf16.vlgmr.msrb.gmra.mxu2 %vm50_vm2, %v783_v20  ;;  %552 = vmatpush.bf16.msrb.mxu1 %v544_v19 }
  0x20   :  { %810 = vmatmul.msk.bf16.vlgmr.msrb.gmra.mxu3 %vm50_vm2, %v797_v22  ;;  %590 = vmatpush.bf16.msrb.mxu2 %v582_v21 }
  0x21   :  { %628 = vmatpush.bf16.msrb.mxu3 %v620_v23 }
  0x22   :  { %515 = vmatpush.bf16.msrb.mxu0 %v953_v24 }
  0x23   :  { %553 = vmatpush.bf16.msrb.mxu1 %v955_v25 }
  0x24   :  { %591 = vmatpush.bf16.msrb.mxu2 %v957_v5  ;;  %v964_v5 = vld [vmem:[%s1256_s4] ss:$0 sm:$0xff] }
  0x25   :  { %629 = vmatpush.bf16.msrb.mxu3 %v959_v26 }
  0x2d   :  { %824 = vmatmul.msk.bf16.vlgmr.msra.gmra.mxu0 %vm50_vm2, %v811_v27 }
  0x2e   :  { %838 = vmatmul.msk.bf16.vlgmr.msra.gmra.mxu1 %vm50_vm2, %v825_v28  ;;  %662 = vmatpush.bf16.msra.mxu0 %v653_v47 }
  0x2f   :  { %852 = vmatmul.msk.bf16.vlgmr.msra.gmra.mxu2 %vm50_vm2, %v839_v29  ;;  %693 = vmatpush.bf16.msra.mxu1 %v961_v61 }
  0x30   :  { %866 = vmatmul.msk.bf16.vlgmr.msra.gmra.mxu3 %vm50_vm2, %v853_v30 }
  0x3d   :  { %880 = vmatmul.msk.bf16.vlgmr.msrb.gmra.mxu0 %vm50_vm2, %v867_v31  ;;  %v965_v31 = vld [vmem:[%s1259_s6] ss:$0 sm:$0xff] }
  0x3e   :  { %894 = vmatmul.msk.bf16.vlgmr.msrb.gmra.mxu1 %vm50_vm2, %v881_v32 }
  0x3f   :  { %908 = vmatmul.msk.bf16.vlgmr.msrb.gmra.mxu2 %vm50_vm2, %v895_v33 }
  0x40   :  { %922 = vmatmul.msk.bf16.vlgmr.msrb.gmra.mxu3 %vm50_vm2, %v909_v34 }
  0x8a   :  { %v70_v35 = vpop.f32.mrf.mxu0 }
  0x8b   :  { %v100_v36 = vpop.f32.mrf.mxu1 }
  0x8c   :  { %v101_v45 = vadd.f32 %v100_v36, %v70_v35 }
  0x92   :  { %v137_v37 = vpop.f32.mrf.mxu2  ;;  %v72_v38 = vpop.f32.mrf.mxu0 }
  0x93   :  { %v175_v39 = vpop.f32.mrf.mxu3  ;;  %v102_v40 = vpop.f32.mrf.mxu1  ;;  %v141_v48 = vadd.f32 %v137_v37, %v101_v45 }
  0x95   :  { %v179_v51 = vadd.f32 %v175_v39, %v141_v48 }
  0x9a   :  { %v139_v41 = vpop.f32.mrf.mxu2  ;;  %v213_v42 = vpop.f32.mrf.mxu0 }
  0x9b   :  { %v177_v43 = vpop.f32.mrf.mxu3  ;;  %v251_v44 = vpop.f32.mrf.mxu1  ;;  %v217_v54 = vadd.f32 %v213_v42, %v179_v51 }
  0x9d   :  { %v255_v55 = vadd.f32 %v251_v44, %v217_v54 }
  0xa2   :  { %v289_v49 = vpop.f32.mrf.mxu2  ;;  %v215_v50 = vpop.f32.mrf.mxu0 }
  0xa3   :  { %v327_v52 = vpop.f32.mrf.mxu3  ;;  %v253_v53 = vpop.f32.mrf.mxu1  ;;  %v293_v58 = vadd.f32 %v289_v49, %v255_v55 }
  0xa5   :  { %v331_v62 = vadd.f32 %v327_v52, %v293_v58 }
  0xaa   :  { %v291_v56 = vpop.f32.mrf.mxu2  ;;  %v365_v57 = vpop.f32.mrf.mxu0 }
  0xab   :  { %v329_v59 = vpop.f32.mrf.mxu3  ;;  %v403_v60 = vpop.f32.mrf.mxu1  ;;  %v369_v63 = vadd.f32 %v365_v57, %v331_v62 }
  0xad   :  { %v407_v4 = vadd.f32 %v403_v60, %v369_v63 }
  0xb2   :  { %v441_v0 = vpop.f32.mrf.mxu2  ;;  %v367_v1 = vpop.f32.mrf.mxu0 }
  0xb3   :  { %v479_v2 = vpop.f32.mrf.mxu3  ;;  %v405_v3 = vpop.f32.mrf.mxu1  ;;  %v445_v6 = vadd.f32 %v441_v0, %v407_v4 }
  0xb5   :  { %v483_v9 = vadd.f32 %v479_v2, %v445_v6 }
  0xba   :  { %v443_v7 = vpop.f32.mrf.mxu2  ;;  %v517_v8 = vpop.f32.mrf.mxu0 }
  0xbb   :  { %v481_v10 = vpop.f32.mrf.mxu3  ;;  %v555_v11 = vpop.f32.mrf.mxu1  ;;  %v521_v12 = vadd.f32 %v517_v8, %v483_v9 }
  0xbd   :  { %v559_v13 = vadd.f32 %v555_v11, %v521_v12 }
  0xc2   :  { %v593_v14 = vpop.f32.mrf.mxu2  ;;  %v519_v15 = vpop.f32.mrf.mxu0 }
  0xc3   :  { %v597_v16 = vadd.f32 %v593_v14, %v559_v13  ;;  %v631_v17 = vpop.f32.mrf.mxu3  ;;  %v557_v19 = vpop.f32.mrf.mxu1 }
  0xc5   :  { %v635_v20 = vadd.f32 %v631_v17, %v597_v16 }
  0xc7   :  { %v640_v21 = vadd.f32 %v963_v18, %v635_v20 }
  0xc9   :  { %v641_v22 = vmax.f32 %v640_v21, 0.0 }
  0xca   :  { %v595_v23 = vpop.f32.mrf.mxu2 }
  0xcb   :  { %v642_v24 = vpack.c.bf16 %v641_v22, %v641_v22  ;;  %v633_v25 = vpop.f32.mrf.mxu3 }
  0xcd   :  { %923 = vmatmul.msk.bf16.vlgmr.msra.gmra.mxu0 %vm648_vm3, %v642_v24 }
 0x14a   :  { %v664_v26 = vpop.f32.mrf.mxu0 }
 0x14b   :  { %v665_v27 = vadd.f32 %v964_v5, %v664_v26 }
 0x14d   :  { %v668_v28 = vmax.f32 %v665_v27, 0.0 }
 0x14f   :  { %v669_v29 = vpack.c.bf16 %v668_v28, %v668_v28 }
 0x151   :  { %928 = vmatmul.msk.bf16.vlgmr.msra.gmra.mxu1 %vm682_vm4, %v669_v29 }
 0x152   :  { %v666_v30 = vpop.f32.mrf.mxu0 }
 0x1ce   :  { %v695_v32 = vpop.f32.mrf.mxu1 }
 0x1cf   :  { %v696_v33 = vadd.f32 %v965_v31, %v695_v32 }
 0x1d1   :  { %699 = vst [vmem:[%s1260_s7] sm:$0xff] %v696_v33 }
 0x1d6   :  { %v697_v34 = vpop.f32.mrf.mxu1 }

</bundles_post_ra>
